<compile_context>
chip_gen: v7x
topology: tpu7x:2x2x1
jax: 0.10.0
libtpu: 0.0.40
codegen_flags: <defaults>
</compile_context>

<pallas_src>
import math
import functools

import jax
import jax.numpy as jnp
from jax.experimental import pallas as pl
from jax.experimental.pallas import tpu as pltpu


# ----------------------------- configuration ------------------------------
EMBED_DIM = 64
NUM_HEADS = 2
DEPTH = 1
MAX_SEQ_LEN = 16
HEAD_DIM = EMBED_DIM // NUM_HEADS // 2          # 16
SCALE = HEAD_DIM ** (-0.5)                      # flash_attn default softmax scale
EPS = 1e-5


def lambda_init_fn(depth):
    return 0.8 - 0.6 * math.exp(-0.3 * depth)


LAMBDA_INIT = lambda_init_fn(DEPTH)


# ------------------------------ Pallas kernel ------------------------------
def diff_attn_kernel(lam_ref, x_ref, qw_ref, kw_ref, vw_ref,
                     cos_ref, sin_ref, ow_ref, o_ref):
    """Fully fused differential attention: projections + rotary + attention +
    RMSNorm + out-proj for ALL batches and heads in one invocation.

    lam_ref: (1,1) f32 SMEM scalar (lambda_full)
    x_ref:   (B, S, E) VMEM
    qw_ref:  (E, E)  q_w.T with softmax scale folded and columns permuted into
                     the packed rotary layout
    kw_ref:  (E, E)  k_w.T with columns permuted (same permutation as q)
    vw_ref:  (E, E)  v_w.T (untouched)
    cos/sin: (S, 2H * D/2) rotary tables tiled across head-branch groups
    ow_ref:  (E, E)  out_w.T with RMSNorm affine weight and (1 - lambda_init)
                     folded into its rows
    o_ref:   (B, S, E) output
    """
    B, S, E = x_ref.shape
    H, D = NUM_HEADS, HEAD_DIM
    Dh = D // 2
    G = 2 * H                       # head-branch groups
    GH = G * Dh                     # width of the packed even/odd half blocks (32)

    lam = lam_ref[0, 0]
    cosT = cos_ref[...]             # (S, GH)
    sinT = sin_ref[...]
    qw = qw_ref[...]
    kw = kw_ref[...]
    vw = vw_ref[...]
    ow = ow_ref[...]

    def dotc(a, b):                 # contract last dims: a @ b.T without explicit .T
        return jax.lax.dot_general(a, b, (((1,), (1,)), ((), ())),
                                    preferred_element_type=jnp.float32)

    def softmax(s):
        # Exact reciprocal: approx=True (bf16-grade) error is amplified by the
        # differential subtraction + RMSNorm and broke the reference check.
        m = jnp.max(s, axis=-1, keepdims=True)
        e = jnp.exp(s - m)
        return e / jnp.sum(e, axis=-1, keepdims=True)

    for b in range(B):              # static loop: grid collapsed to a single step
        xb = x_ref[b]                                                    # (S, E)
        q_all = jnp.dot(xb, qw, preferred_element_type=jnp.float32)     # scaled, permuted
        k_all = jnp.dot(xb, kw, preferred_element_type=jnp.float32)     # permuted
        v_all = jnp.dot(xb, vw, preferred_element_type=jnp.float32)     # head-major (h, 2D)

        # Interleaved RoPE in the packed basis: two full-width FMAs per tensor.
        qa, qo = q_all[:, :GH], q_all[:, GH:]
        ka, ko = k_all[:, :GH], k_all[:, GH:]
        qra = qa * cosT - qo * sinT          # rotated even-pair elements (q already scaled)
        qro = qa * sinT + qo * cosT          # rotated odd-pair elements
        kra = ka * cosT - ko * sinT
        kro = ka * sinT + ko * cosT

        out_b = jnp.zeros((S, E), jnp.float32)
        for h in range(H):                   # static: H tiny
            c1 = slice((2 * h) * Dh, (2 * h + 1) * Dh)        # branch-1 group columns
            c2 = slice((2 * h + 1) * Dh, (2 * h + 2) * Dh)    # branch-2 group columns
            s1 = dotc(qra[:, c1], kra[:, c1]) + dotc(qro[:, c1], kro[:, c1])
            s2 = dotc(qra[:, c2], kra[:, c2]) + dotc(qro[:, c2], kro[:, c2])

            # differential combine fused into a single PV matmul:
            # (P1 - lam*P2) @ V  ==  P1@V - lam*(P2@V)
            p_diff = softmax(s1) - lam * softmax(s2)
            vh = v_all[:, h * 2 * D:(h + 1) * 2 * D]                      # (S, 2D)
            a = jnp.dot(p_diff, vh, preferred_element_type=jnp.float32)   # (S, 2D)

            # per-head RMSNorm; affine weight and (1-lambda_init) are folded into ow
            a = a * jax.lax.rsqrt(jnp.mean(a * a, axis=-1, keepdims=True) + EPS)

            # accumulate straight into the output projection (no head concat)
            out_b = out_b + jnp.dot(a, ow[h * 2 * D:(h + 1) * 2 * D, :],
                                    preferred_element_type=jnp.float32)
        o_ref[b] = out_b.astype(o_ref.dtype)


# ------------------------------- JAX wrapper --------------------------------
def multihead_flash_diff2_forward(x, params):
    B, S, E = x.shape
    H, D = NUM_HEADS, HEAD_DIM
    Dh = D // 2
    G = 2 * H

    # --- trace-time weight folding (params are jit closure constants) ---
    # Column permutation: within every (head, branch) group of D features,
    # de-interleave rotary pairs and pack [even elems of all groups | odd elems].
    perm_a = [g * D + 2 * i for g in range(G) for i in range(Dh)]
    perm_b = [g * D + 2 * i + 1 for g in range(G) for i in range(Dh)]
    perm = jnp.array(perm_a + perm_b, dtype=jnp.int32)

    qw = (params["q_w"].T * SCALE)[:, perm]          # softmax scale folded into q
    kw = params["k_w"].T[:, perm]
    vw = params["v_w"].T

    # RMSNorm affine weight and (1 - lambda_init) folded into out_proj rows.
    gscale = jnp.tile(params["subln_w"], (H,)) * (1.0 - LAMBDA_INIT)     # (E,)
    ow = gscale[:, None] * params["out_w"].T                             # (E, E)

    # rotary tables in the packed layout, tiled across the 2H groups
    angle = 1.0 / (10000.0 ** jnp.linspace(0.0, 1.0, Dh, dtype=jnp.float32))
    freqs = jnp.arange(MAX_SEQ_LEN, dtype=jnp.float32)[:, None] * angle  # (max_seq, Dh)
    cosT = jnp.tile(jnp.cos(freqs[:S]), (1, G))                          # (S, G*Dh)
    sinT = jnp.tile(jnp.sin(freqs[:S]), (1, G))

    lambda_full = (jnp.exp(jnp.sum(params["lambda_q1"] * params["lambda_k1"]))
                   - jnp.exp(jnp.sum(params["lambda_q2"] * params["lambda_k2"]))
                   + LAMBDA_INIT)
    lam = jnp.reshape(lambda_full, (1, 1)).astype(jnp.float32)           # SMEM scalar

    # advisory cost model so XLA schedules neighbours around the custom call
    flops = B * (3 * 2 * S * E * E                     # q/k/v projections
                 + H * (2 * 2 * 2 * S * S * Dh)        # score matmuls (2 branches x 2 halves)
                 + H * 2 * S * S * 2 * D               # PV matmuls
                 + H * 2 * S * 2 * D * E)              # out-proj accumulation
    transcendentals = B * H * 2 * S * S
    bytes_accessed = 4 * (2 * B * S * E + 4 * E * E + 2 * S * G * Dh + 1)

    return pl.pallas_call(
        diff_attn_kernel,
        out_shape=jax.ShapeDtypeStruct((B, S, E), jnp.float32),
        in_specs=[pl.BlockSpec(memory_space=pltpu.MemorySpace.SMEM)]      # lam
                 + [pl.BlockSpec(memory_space=pltpu.MemorySpace.VMEM)] * 7,
        out_specs=pl.BlockSpec(memory_space=pltpu.MemorySpace.VMEM),
        cost_estimate=pl.CostEstimate(flops=flops,
                                      transcendentals=transcendentals,
                                      bytes_accessed=bytes_accessed),
    )(lam, x.astype(jnp.float32), qw, kw, vw, cosT, sinT, ow)


# ---------------------- pure-JAX reference (for checking) ------------------
def apply_rotary_interleaved(x, cos, sin):
    """x: (B, S, NH, D); cos/sin: (S, D//2). Interleaved (pairwise) rotary."""
    x1 = x[..., 0::2]
    x2 = x[..., 1::2]
    c = cos[None, :, None, :]
    s = sin[None, :, None, :]
    even = x1 * c - x2 * s
    odd = x1 * s + x2 * c
    return jnp.stack([even, odd], axis=-1).reshape(x.shape)


def reference_forward(x, params):
    B, S, E = x.shape
    H, D = NUM_HEADS, HEAD_DIM
    q = x @ params["q_w"].T
    k = x @ params["k_w"].T
    v = x @ params["v_w"].T
    q = q.reshape(B, S, 2 * H, D)
    k = k.reshape(B, S, 2 * H, D)
    v = v.reshape(B, S, H, 2, D)
    angle = 1.0 / (10000.0 ** jnp.linspace(0.0, 1.0, D // 2, dtype=jnp.float32))
    freqs = jnp.arange(MAX_SEQ_LEN, dtype=jnp.float32)[:, None] * angle
    cos, sin = jnp.cos(freqs[:S]), jnp.sin(freqs[:S])
    q = apply_rotary_interleaved(q, cos, sin)
    k = apply_rotary_interleaved(k, cos, sin)
    q = q.reshape(B, S, H, 2, D)
    k = k.reshape(B, S, H, 2, D)
    q1, q2 = q[:, :, :, 0], q[:, :, :, 1]
    k1, k2 = k[:, :, :, 0], k[:, :, :, 1]
    vc = v.reshape(B, S, H, 2 * D)

    def attend(qq, kk):
        s = jnp.einsum("bqhd,bkhd->bhqk", qq, kk) * SCALE
        p = jax.nn.softmax(s, axis=-1)
        return jnp.einsum("bhqk,bkhd->bqhd", p, vc)

    a1, a2 = attend(q1, k1), attend(q2, k2)
    lam = (jnp.exp(jnp.sum(params["lambda_q1"] * params["lambda_k1"]))
           - jnp.exp(jnp.sum(params["lambda_q2"] * params["lambda_k2"]))
           + LAMBDA_INIT)
    attn = a1 - lam * a2
    attn = attn * jax.lax.rsqrt(jnp.mean(attn * attn, -1, keepdims=True) + EPS)
    attn = attn * params["subln_w"]
    attn = attn * (1.0 - LAMBDA_INIT)
    attn = attn.reshape(B, S, H * 2 * D)
    return attn @ params["out_w"].T


# --------------------------- parameter creation -----------------------------
def xavier_uniform(key, shape):
    fan_out, fan_in = shape
    bound = math.sqrt(6.0 / (fan_in + fan_out))
    return jax.random.uniform(key, shape, jnp.float32, -bound, bound)


def make_params(key):
    ks = jax.random.split(key, 9)
    return {
        "q_w": xavier_uniform(ks[0], (EMBED_DIM, EMBED_DIM)),
        "k_w": xavier_uniform(ks[1], (EMBED_DIM, EMBED_DIM)),   # n_rep == 1
        "v_w": xavier_uniform(ks[2], (EMBED_DIM, EMBED_DIM)),
        "out_w": xavier_uniform(ks[3], (EMBED_DIM, EMBED_DIM)),
        "lambda_q1": 0.1 * jax.random.normal(ks[4], (HEAD_DIM,), jnp.float32),
        "lambda_k1": 0.1 * jax.random.normal(ks[5], (HEAD_DIM,), jnp.float32),
        "lambda_q2": 0.1 * jax.random.normal(ks[6], (HEAD_DIM,), jnp.float32),
        "lambda_k2": 0.1 * jax.random.normal(ks[7], (HEAD_DIM,), jnp.float32),
        "subln_w": jnp.ones((2 * HEAD_DIM,), jnp.float32),       # RMSNorm affine init
    }


# --------------------------------- main -------------------------------------
if __name__ == "__main__":
    key = jax.random.PRNGKey(0)
    pkey, xkey = jax.random.split(key)
    params = make_params(pkey)

    B, S = 2, 8
    x = jax.random.normal(xkey, (B, S, EMBED_DIM), jnp.float32)

    fwd = jax.jit(functools.partial(multihead_flash_diff2_forward, params=params))
    out = jax.block_until_ready(fwd(x))

    ref = reference_forward(x, params)
    assert out.shape == (B, S, EMBED_DIM)
    assert jnp.allclose(out, ref, rtol=2e-3, atol=2e-3), "mismatch vs reference"

    print("KERNEL_OK")
</pallas_src>

<mosaic_0001>
module attributes {stable_mosaic.version = 11 : i64} {
  func.func @diff_attn_kernel(%arg0: memref<1x1xf32, #tpu.memory_space<smem>>, %arg1: memref<2x8x64xf32, #tpu.memory_space<vmem>>, %arg2: memref<64x64xf32, #tpu.memory_space<vmem>>, %arg3: memref<64x64xf32, #tpu.memory_space<vmem>>, %arg4: memref<64x64xf32, #tpu.memory_space<vmem>>, %arg5: memref<8x32xf32, #tpu.memory_space<vmem>>, %arg6: memref<8x32xf32, #tpu.memory_space<vmem>>, %arg7: memref<64x64xf32, #tpu.memory_space<vmem>>, %arg8: memref<2x8x64xf32, #tpu.memory_space<vmem>>) attributes {dimension_semantics = [], scalar_prefetch = 0 : i64, scratch_operands = 0 : i64, tpu.core_type = #tpu.core_type<tc>} {
    %c0 = arith.constant 0 : index
    %c0_0 = arith.constant 0 : index
    %0 = memref.load %arg0[%c0, %c0_0] : memref<1x1xf32, #tpu.memory_space<smem>>
    %c0_1 = arith.constant 0 : index
    %c0_2 = arith.constant 0 : index
    %1 = vector.load %arg5[%c0_1, %c0_2] : memref<8x32xf32, #tpu.memory_space<vmem>>, vector<8x32xf32>
    %c0_3 = arith.constant 0 : index
    %c0_4 = arith.constant 0 : index
    %2 = vector.load %arg6[%c0_3, %c0_4] : memref<8x32xf32, #tpu.memory_space<vmem>>, vector<8x32xf32>
    %c0_5 = arith.constant 0 : index
    %c0_6 = arith.constant 0 : index
    %3 = vector.load %arg2[%c0_5, %c0_6] : memref<64x64xf32, #tpu.memory_space<vmem>>, vector<64x64xf32>
    %c0_7 = arith.constant 0 : index
    %c0_8 = arith.constant 0 : index
    %4 = vector.load %arg3[%c0_7, %c0_8] : memref<64x64xf32, #tpu.memory_space<vmem>>, vector<64x64xf32>
    %c0_9 = arith.constant 0 : index
    %c0_10 = arith.constant 0 : index
    %5 = vector.load %arg4[%c0_9, %c0_10] : memref<64x64xf32, #tpu.memory_space<vmem>>, vector<64x64xf32>
    %c0_11 = arith.constant 0 : index
    %c0_12 = arith.constant 0 : index
    %6 = vector.load %arg7[%c0_11, %c0_12] : memref<64x64xf32, #tpu.memory_space<vmem>>, vector<64x64xf32>
    %c0_13 = arith.constant 0 : index
    %c0_14 = arith.constant 0 : index
    %c0_15 = arith.constant 0 : index
    %7 = vector.load %arg1[%c0_13, %c0_14, %c0_15] : memref<2x8x64xf32, #tpu.memory_space<vmem>>, vector<1x8x64xf32>
    %8 = vector.shape_cast %7 : vector<1x8x64xf32> to vector<8x64xf32>
    %cst = arith.constant dense<0.000000e+00> : vector<8x64xf32>
    %9 = tpu.matmul %8, %3, %cst {dimension_numbers = #tpu.dot_dimension_numbers<[1], [0], [0], [1], [0, 0, 1, 1], [], []>} : vector<8x64xf32>, vector<64x64xf32>, vector<8x64xf32> -> vector<8x64xf32>
    %cst_16 = arith.constant dense<0.000000e+00> : vector<8x64xf32>
    %10 = tpu.matmul %8, %4, %cst_16 {dimension_numbers = #tpu.dot_dimension_numbers<[1], [0], [0], [1], [0, 0, 1, 1], [], []>} : vector<8x64xf32>, vector<64x64xf32>, vector<8x64xf32> -> vector<8x64xf32>
    %cst_17 = arith.constant dense<0.000000e+00> : vector<8x64xf32>
    %11 = tpu.matmul %8, %5, %cst_17 {dimension_numbers = #tpu.dot_dimension_numbers<[1], [0], [0], [1], [0, 0, 1, 1], [], []>} : vector<8x64xf32>, vector<64x64xf32>, vector<8x64xf32> -> vector<8x64xf32>
    %12 = vector.extract_strided_slice %9 {offsets = [0, 0], sizes = [8, 32], strides = [1, 1]} : vector<8x64xf32> to vector<8x32xf32>
    %13 = vector.extract_strided_slice %9 {offsets = [0, 32], sizes = [8, 32], strides = [1, 1]} : vector<8x64xf32> to vector<8x32xf32>
    %14 = vector.extract_strided_slice %10 {offsets = [0, 0], sizes = [8, 32], strides = [1, 1]} : vector<8x64xf32> to vector<8x32xf32>
    %15 = vector.extract_strided_slice %10 {offsets = [0, 32], sizes = [8, 32], strides = [1, 1]} : vector<8x64xf32> to vector<8x32xf32>
    %16 = arith.mulf %12, %1 : vector<8x32xf32>
    %17 = arith.mulf %13, %2 : vector<8x32xf32>
    %18 = arith.subf %16, %17 : vector<8x32xf32>
    %19 = arith.mulf %12, %2 : vector<8x32xf32>
    %20 = arith.mulf %13, %1 : vector<8x32xf32>
    %21 = arith.addf %19, %20 : vector<8x32xf32>
    %22 = arith.mulf %14, %1 : vector<8x32xf32>
    %23 = arith.mulf %15, %2 : vector<8x32xf32>
    %24 = arith.subf %22, %23 : vector<8x32xf32>
    %25 = arith.mulf %14, %2 : vector<8x32xf32>
    %26 = arith.mulf %15, %1 : vector<8x32xf32>
    %27 = arith.addf %25, %26 : vector<8x32xf32>
    %cst_18 = arith.constant 0.000000e+00 : f32
    %28 = vector.broadcast %cst_18 : f32 to vector<8x64xf32>
    %29 = vector.extract_strided_slice %18 {offsets = [0, 0], sizes = [8, 8], strides = [1, 1]} : vector<8x32xf32> to vector<8x8xf32>
    %30 = vector.extract_strided_slice %24 {offsets = [0, 0], sizes = [8, 8], strides = [1, 1]} : vector<8x32xf32> to vector<8x8xf32>
    %cst_19 = arith.constant dense<0.000000e+00> : vector<8x8xf32>
    %31 = tpu.matmul %29, %30, %cst_19 {dimension_numbers = #tpu.dot_dimension_numbers<[1], [1], [0], [0], [0, 0, 1, 0], [], []>} : vector<8x8xf32>, vector<8x8xf32>, vector<8x8xf32> -> vector<8x8xf32>
    %32 = vector.extract_strided_slice %21 {offsets = [0, 0], sizes = [8, 8], strides = [1, 1]} : vector<8x32xf32> to vector<8x8xf32>
    %33 = vector.extract_strided_slice %27 {offsets = [0, 0], sizes = [8, 8], strides = [1, 1]} : vector<8x32xf32> to vector<8x8xf32>
    %cst_20 = arith.constant dense<0.000000e+00> : vector<8x8xf32>
    %34 = tpu.matmul %32, %33, %cst_20 {dimension_numbers = #tpu.dot_dimension_numbers<[1], [1], [0], [0], [0, 0, 1, 0], [], []>} : vector<8x8xf32>, vector<8x8xf32>, vector<8x8xf32> -> vector<8x8xf32>
    %35 = arith.addf %31, %34 : vector<8x8xf32>
    %36 = vector.extract_strided_slice %18 {offsets = [0, 8], sizes = [8, 8], strides = [1, 1]} : vector<8x32xf32> to vector<8x8xf32>
    %37 = vector.extract_strided_slice %24 {offsets = [0, 8], sizes = [8, 8], strides = [1, 1]} : vector<8x32xf32> to vector<8x8xf32>
    %cst_21 = arith.constant dense<0.000000e+00> : vector<8x8xf32>
    %38 = tpu.matmul %36, %37, %cst_21 {dimension_numbers = #tpu.dot_dimension_numbers<[1], [1], [0], [0], [0, 0, 1, 0], [], []>} : vector<8x8xf32>, vector<8x8xf32>, vector<8x8xf32> -> vector<8x8xf32>
    %39 = vector.extract_strided_slice %21 {offsets = [0, 8], sizes = [8, 8], strides = [1, 1]} : vector<8x32xf32> to vector<8x8xf32>
    %40 = vector.extract_strided_slice %27 {offsets = [0, 8], sizes = [8, 8], strides = [1, 1]} : vector<8x32xf32> to vector<8x8xf32>
    %cst_22 = arith.constant dense<0.000000e+00> : vector<8x8xf32>
    %41 = tpu.matmul %39, %40, %cst_22 {dimension_numbers = #tpu.dot_dimension_numbers<[1], [1], [0], [0], [0, 0, 1, 0], [], []>} : vector<8x8xf32>, vector<8x8xf32>, vector<8x8xf32> -> vector<8x8xf32>
    %42 = arith.addf %38, %41 : vector<8x8xf32>
    %cst_23 = arith.constant dense<0xFF800000> : vector<8xf32>
    %43 = vector.multi_reduction <maximumf>, %35, %cst_23 [1] : vector<8x8xf32> to vector<8xf32>
    %44 = vector.shape_cast %43 : vector<8xf32> to vector<8x1xf32>
    %45 = vector.broadcast %44 : vector<8x1xf32> to vector<8x8xf32>
    %46 = arith.subf %35, %45 : vector<8x8xf32>
    %47 = math.exp %46 : vector<8x8xf32>
    %cst_24 = arith.constant dense<0.000000e+00> : vector<8xf32>
    %48 = vector.multi_reduction <add>, %47, %cst_24 [1] : vector<8x8xf32> to vector<8xf32>
    %49 = vector.shape_cast %48 : vector<8xf32> to vector<8x1xf32>
    %50 = vector.broadcast %49 : vector<8x1xf32> to vector<8x8xf32>
    %51 = arith.divf %47, %50 : vector<8x8xf32>
    %cst_25 = arith.constant dense<0xFF800000> : vector<8xf32>
    %52 = vector.multi_reduction <maximumf>, %42, %cst_25 [1] : vector<8x8xf32> to vector<8xf32>
    %53 = vector.shape_cast %52 : vector<8xf32> to vector<8x1xf32>
    %54 = vector.broadcast %53 : vector<8x1xf32> to vector<8x8xf32>
    %55 = arith.subf %42, %54 : vector<8x8xf32>
    %56 = math.exp %55 : vector<8x8xf32>
    %cst_26 = arith.constant dense<0.000000e+00> : vector<8xf32>
    %57 = vector.multi_reduction <add>, %56, %cst_26 [1] : vector<8x8xf32> to vector<8xf32>
    %58 = vector.shape_cast %57 : vector<8xf32> to vector<8x1xf32>
    %59 = vector.broadcast %58 : vector<8x1xf32> to vector<8x8xf32>
    %60 = arith.divf %56, %59 : vector<8x8xf32>
    %61 = vector.broadcast %0 : f32 to vector<8x8xf32>
    %62 = arith.mulf %61, %60 : vector<8x8xf32>
    %63 = arith.subf %51, %62 : vector<8x8xf32>
    %64 = vector.extract_strided_slice %11 {offsets = [0, 0], sizes = [8, 32], strides = [1, 1]} : vector<8x64xf32> to vector<8x32xf32>
    %cst_27 = arith.constant dense<0.000000e+00> : vector<8x32xf32>
    %65 = tpu.matmul %63, %64, %cst_27 {dimension_numbers = #tpu.dot_dimension_numbers<[1], [0], [0], [1], [0, 0, 1, 1], [], []>} : vector<8x8xf32>, vector<8x32xf32>, vector<8x32xf32> -> vector<8x32xf32>
    %66 = arith.mulf %65, %65 : vector<8x32xf32>
    %cst_28 = arith.constant dense<0.000000e+00> : vector<8xf32>
    %67 = vector.multi_reduction <add>, %66, %cst_28 [1] : vector<8x32xf32> to vector<8xf32>
    %68 = vector.shape_cast %67 : vector<8xf32> to vector<8x1xf32>
    %cst_29 = arith.constant 3.200000e+01 : f32
    %69 = vector.broadcast %cst_29 : f32 to vector<8x1xf32>
    %70 = arith.divf %68, %69 : vector<8x1xf32>
    %cst_30 = arith.constant 9.99999974E-6 : f32
    %71 = vector.broadcast %cst_30 : f32 to vector<8x1xf32>
    %72 = arith.addf %70, %71 : vector<8x1xf32>
    %73 = math.rsqrt %72 : vector<8x1xf32>
    %74 = vector.broadcast %73 : vector<8x1xf32> to vector<8x32xf32>
    %75 = arith.mulf %65, %74 : vector<8x32xf32>
    %76 = vector.extract_strided_slice %6 {offsets = [0, 0], sizes = [32, 64], strides = [1, 1]} : vector<64x64xf32> to vector<32x64xf32>
    %cst_31 = arith.constant dense<0.000000e+00> : vector<8x64xf32>
    %77 = tpu.matmul %75, %76, %cst_31 {dimension_numbers = #tpu.dot_dimension_numbers<[1], [0], [0], [1], [0, 0, 1, 1], [], []>} : vector<8x32xf32>, vector<32x64xf32>, vector<8x64xf32> -> vector<8x64xf32>
    %78 = arith.addf %28, %77 : vector<8x64xf32>
    %79 = vector.extract_strided_slice %18 {offsets = [0, 16], sizes = [8, 8], strides = [1, 1]} : vector<8x32xf32> to vector<8x8xf32>
    %80 = vector.extract_strided_slice %24 {offsets = [0, 16], sizes = [8, 8], strides = [1, 1]} : vector<8x32xf32> to vector<8x8xf32>
    %cst_32 = arith.constant dense<0.000000e+00> : vector<8x8xf32>
    %81 = tpu.matmul %79, %80, %cst_32 {dimension_numbers = #tpu.dot_dimension_numbers<[1], [1], [0], [0], [0, 0, 1, 0], [], []>} : vector<8x8xf32>, vector<8x8xf32>, vector<8x8xf32> -> vector<8x8xf32>
    %82 = vector.extract_strided_slice %21 {offsets = [0, 16], sizes = [8, 8], strides = [1, 1]} : vector<8x32xf32> to vector<8x8xf32>
    %83 = vector.extract_strided_slice %27 {offsets = [0, 16], sizes = [8, 8], strides = [1, 1]} : vector<8x32xf32> to vector<8x8xf32>
    %cst_33 = arith.constant dense<0.000000e+00> : vector<8x8xf32>
    %84 = tpu.matmul %82, %83, %cst_33 {dimension_numbers = #tpu.dot_dimension_numbers<[1], [1], [0], [0], [0, 0, 1, 0], [], []>} : vector<8x8xf32>, vector<8x8xf32>, vector<8x8xf32> -> vector<8x8xf32>
    %85 = arith.addf %81, %84 : vector<8x8xf32>
    %86 = vector.extract_strided_slice %18 {offsets = [0, 24], sizes = [8, 8], strides = [1, 1]} : vector<8x32xf32> to vector<8x8xf32>
    %87 = vector.extract_strided_slice %24 {offsets = [0, 24], sizes = [8, 8], strides = [1, 1]} : vector<8x32xf32> to vector<8x8xf32>
    %cst_34 = arith.constant dense<0.000000e+00> : vector<8x8xf32>
    %88 = tpu.matmul %86, %87, %cst_34 {dimension_numbers = #tpu.dot_dimension_numbers<[1], [1], [0], [0], [0, 0, 1, 0], [], []>} : vector<8x8xf32>, vector<8x8xf32>, vector<8x8xf32> -> vector<8x8xf32>
    %89 = vector.extract_strided_slice %21 {offsets = [0, 24], sizes = [8, 8], strides = [1, 1]} : vector<8x32xf32> to vector<8x8xf32>
    %90 = vector.extract_strided_slice %27 {offsets = [0, 24], sizes = [8, 8], strides = [1, 1]} : vector<8x32xf32> to vector<8x8xf32>
    %cst_35 = arith.constant dense<0.000000e+00> : vector<8x8xf32>
    %91 = tpu.matmul %89, %90, %cst_35 {dimension_numbers = #tpu.dot_dimension_numbers<[1], [1], [0], [0], [0, 0, 1, 0], [], []>} : vector<8x8xf32>, vector<8x8xf32>, vector<8x8xf32> -> vector<8x8xf32>
    %92 = arith.addf %88, %91 : vector<8x8xf32>
    %cst_36 = arith.constant dense<0xFF800000> : vector<8xf32>
    %93 = vector.multi_reduction <maximumf>, %85, %cst_36 [1] : vector<8x8xf32> to vector<8xf32>
    %94 = vector.shape_cast %93 : vector<8xf32> to vector<8x1xf32>
    %95 = vector.broadcast %94 : vector<8x1xf32> to vector<8x8xf32>
    %96 = arith.subf %85, %95 : vector<8x8xf32>
    %97 = math.exp %96 : vector<8x8xf32>
    %cst_37 = arith.constant dense<0.000000e+00> : vector<8xf32>
    %98 = vector.multi_reduction <add>, %97, %cst_37 [1] : vector<8x8xf32> to vector<8xf32>
    %99 = vector.shape_cast %98 : vector<8xf32> to vector<8x1xf32>
    %100 = vector.broadcast %99 : vector<8x1xf32> to vector<8x8xf32>
    %101 = arith.divf %97, %100 : vector<8x8xf32>
    %cst_38 = arith.constant dense<0xFF800000> : vector<8xf32>
    %102 = vector.multi_reduction <maximumf>, %92, %cst_38 [1] : vector<8x8xf32> to vector<8xf32>
    %103 = vector.shape_cast %102 : vector<8xf32> to vector<8x1xf32>
    %104 = vector.broadcast %103 : vector<8x1xf32> to vector<8x8xf32>
    %105 = arith.subf %92, %104 : vector<8x8xf32>
    %106 = math.exp %105 : vector<8x8xf32>
    %cst_39 = arith.constant dense<0.000000e+00> : vector<8xf32>
    %107 = vector.multi_reduction <add>, %106, %cst_39 [1] : vector<8x8xf32> to vector<8xf32>
    %108 = vector.shape_cast %107 : vector<8xf32> to vector<8x1xf32>
    %109 = vector.broadcast %108 : vector<8x1xf32> to vector<8x8xf32>
    %110 = arith.divf %106, %109 : vector<8x8xf32>
    %111 = vector.broadcast %0 : f32 to vector<8x8xf32>
    %112 = arith.mulf %111, %110 : vector<8x8xf32>
    %113 = arith.subf %101, %112 : vector<8x8xf32>
    %114 = vector.extract_strided_slice %11 {offsets = [0, 32], sizes = [8, 32], strides = [1, 1]} : vector<8x64xf32> to vector<8x32xf32>
    %cst_40 = arith.constant dense<0.000000e+00> : vector<8x32xf32>
    %115 = tpu.matmul %113, %114, %cst_40 {dimension_numbers = #tpu.dot_dimension_numbers<[1], [0], [0], [1], [0, 0, 1, 1], [], []>} : vector<8x8xf32>, vector<8x32xf32>, vector<8x32xf32> -> vector<8x32xf32>
    %116 = arith.mulf %115, %115 : vector<8x32xf32>
    %cst_41 = arith.constant dense<0.000000e+00> : vector<8xf32>
    %117 = vector.multi_reduction <add>, %116, %cst_41 [1] : vector<8x32xf32> to vector<8xf32>
    %118 = vector.shape_cast %117 : vector<8xf32> to vector<8x1xf32>
    %cst_42 = arith.constant 3.200000e+01 : f32
    %119 = vector.broadcast %cst_42 : f32 to vector<8x1xf32>
    %120 = arith.divf %118, %119 : vector<8x1xf32>
    %cst_43 = arith.constant 9.99999974E-6 : f32
    %121 = vector.broadcast %cst_43 : f32 to vector<8x1xf32>
    %122 = arith.addf %120, %121 : vector<8x1xf32>
    %123 = math.rsqrt %122 : vector<8x1xf32>
    %124 = vector.broadcast %123 : vector<8x1xf32> to vector<8x32xf32>
    %125 = arith.mulf %115, %124 : vector<8x32xf32>
    %126 = vector.extract_strided_slice %6 {offsets = [32, 0], sizes = [32, 64], strides = [1, 1]} : vector<64x64xf32> to vector<32x64xf32>
    %cst_44 = arith.constant dense<0.000000e+00> : vector<8x64xf32>
    %127 = tpu.matmul %125, %126, %cst_44 {dimension_numbers = #tpu.dot_dimension_numbers<[1], [0], [0], [1], [0, 0, 1, 1], [], []>} : vector<8x32xf32>, vector<32x64xf32>, vector<8x64xf32> -> vector<8x64xf32>
    %128 = arith.addf %78, %127 : vector<8x64xf32>
    %c0_45 = arith.constant 0 : index
    %c0_46 = arith.constant 0 : index
    %c0_47 = arith.constant 0 : index
    %129 = vector.load %arg8[%c0_45, %c0_46, %c0_47] : memref<2x8x64xf32, #tpu.memory_space<vmem>>, vector<1x8x64xf32>
    %130 = vector.shape_cast %129 : vector<1x8x64xf32> to vector<8x64xf32>
    %131 = vector.shape_cast %128 : vector<8x64xf32> to vector<1x8x64xf32>
    tpu.vector_store %arg8[%c0_45, %c0_46, %c0_47], %131 {strides = array<i32>} : memref<2x8x64xf32, #tpu.memory_space<vmem>>, vector<1x8x64xf32>,
    %c1 = arith.constant 1 : index
    %c0_48 = arith.constant 0 : index
    %c0_49 = arith.constant 0 : index
    %132 = vector.load %arg1[%c1, %c0_48, %c0_49] : memref<2x8x64xf32, #tpu.memory_space<vmem>>, vector<1x8x64xf32>
    %133 = vector.shape_cast %132 : vector<1x8x64xf32> to vector<8x64xf32>
    %cst_50 = arith.constant dense<0.000000e+00> : vector<8x64xf32>
    %134 = tpu.matmul %133, %3, %cst_50 {dimension_numbers = #tpu.dot_dimension_numbers<[1], [0], [0], [1], [0, 0, 1, 1], [], []>} : vector<8x64xf32>, vector<64x64xf32>, vector<8x64xf32> -> vector<8x64xf32>
    %cst_51 = arith.constant dense<0.000000e+00> : vector<8x64xf32>
    %135 = tpu.matmul %133, %4, %cst_51 {dimension_numbers = #tpu.dot_dimension_numbers<[1], [0], [0], [1], [0, 0, 1, 1], [], []>} : vector<8x64xf32>, vector<64x64xf32>, vector<8x64xf32> -> vector<8x64xf32>
    %cst_52 = arith.constant dense<0.000000e+00> : vector<8x64xf32>
    %136 = tpu.matmul %133, %5, %cst_52 {dimension_numbers = #tpu.dot_dimension_numbers<[1], [0], [0], [1], [0, 0, 1, 1], [], []>} : vector<8x64xf32>, vector<64x64xf32>, vector<8x64xf32> -> vector<8x64xf32>
    %137 = vector.extract_strided_slice %134 {offsets = [0, 0], sizes = [8, 32], strides = [1, 1]} : vector<8x64xf32> to vector<8x32xf32>
    %138 = vector.extract_strided_slice %134 {offsets = [0, 32], sizes = [8, 32], strides = [1, 1]} : vector<8x64xf32> to vector<8x32xf32>
    %139 = vector.extract_strided_slice %135 {offsets = [0, 0], sizes = [8, 32], strides = [1, 1]} : vector<8x64xf32> to vector<8x32xf32>
    %140 = vector.extract_strided_slice %135 {offsets = [0, 32], sizes = [8, 32], strides = [1, 1]} : vector<8x64xf32> to vector<8x32xf32>
    %141 = arith.mulf %137, %1 : vector<8x32xf32>
    %142 = arith.mulf %138, %2 : vector<8x32xf32>
    %143 = arith.subf %141, %142 : vector<8x32xf32>
    %144 = arith.mulf %137, %2 : vector<8x32xf32>
    %145 = arith.mulf %138, %1 : vector<8x32xf32>
    %146 = arith.addf %144, %145 : vector<8x32xf32>
    %147 = arith.mulf %139, %1 : vector<8x32xf32>
    %148 = arith.mulf %140, %2 : vector<8x32xf32>
    %149 = arith.subf %147, %148 : vector<8x32xf32>
    %150 = arith.mulf %139, %2 : vector<8x32xf32>
    %151 = arith.mulf %140, %1 : vector<8x32xf32>
    %152 = arith.addf %150, %151 : vector<8x32xf32>
    %cst_53 = arith.constant 0.000000e+00 : f32
    %153 = vector.broadcast %cst_53 : f32 to vector<8x64xf32>
    %154 = vector.extract_strided_slice %143 {offsets = [0, 0], sizes = [8, 8], strides = [1, 1]} : vector<8x32xf32> to vector<8x8xf32>
    %155 = vector.extract_strided_slice %149 {offsets = [0, 0], sizes = [8, 8], strides = [1, 1]} : vector<8x32xf32> to vector<8x8xf32>
    %cst_54 = arith.constant dense<0.000000e+00> : vector<8x8xf32>
    %156 = tpu.matmul %154, %155, %cst_54 {dimension_numbers = #tpu.dot_dimension_numbers<[1], [1], [0], [0], [0, 0, 1, 0], [], []>} : vector<8x8xf32>, vector<8x8xf32>, vector<8x8xf32> -> vector<8x8xf32>
    %157 = vector.extract_strided_slice %146 {offsets = [0, 0], sizes = [8, 8], strides = [1, 1]} : vector<8x32xf32> to vector<8x8xf32>
    %158 = vector.extract_strided_slice %152 {offsets = [0, 0], sizes = [8, 8], strides = [1, 1]} : vector<8x32xf32> to vector<8x8xf32>
    %cst_55 = arith.constant dense<0.000000e+00> : vector<8x8xf32>
    %159 = tpu.matmul %157, %158, %cst_55 {dimension_numbers = #tpu.dot_dimension_numbers<[1], [1], [0], [0], [0, 0, 1, 0], [], []>} : vector<8x8xf32>, vector<8x8xf32>, vector<8x8xf32> -> vector<8x8xf32>
    %160 = arith.addf %156, %159 : vector<8x8xf32>
    %161 = vector.extract_strided_slice %143 {offsets = [0, 8], sizes = [8, 8], strides = [1, 1]} : vector<8x32xf32> to vector<8x8xf32>
    %162 = vector.extract_strided_slice %149 {offsets = [0, 8], sizes = [8, 8], strides = [1, 1]} : vector<8x32xf32> to vector<8x8xf32>
    %cst_56 = arith.constant dense<0.000000e+00> : vector<8x8xf32>
    %163 = tpu.matmul %161, %162, %cst_56 {dimension_numbers = #tpu.dot_dimension_numbers<[1], [1], [0], [0], [0, 0, 1, 0], [], []>} : vector<8x8xf32>, vector<8x8xf32>, vector<8x8xf32> -> vector<8x8xf32>
    %164 = vector.extract_strided_slice %146 {offsets = [0, 8], sizes = [8, 8], strides = [1, 1]} : vector<8x32xf32> to vector<8x8xf32>
    %165 = vector.extract_strided_slice %152 {offsets = [0, 8], sizes = [8, 8], strides = [1, 1]} : vector<8x32xf32> to vector<8x8xf32>
    %cst_57 = arith.constant dense<0.000000e+00> : vector<8x8xf32>
    %166 = tpu.matmul %164, %165, %cst_57 {dimension_numbers = #tpu.dot_dimension_numbers<[1], [1], [0], [0], [0, 0, 1, 0], [], []>} : vector<8x8xf32>, vector<8x8xf32>, vector<8x8xf32> -> vector<8x8xf32>
    %167 = arith.addf %163, %166 : vector<8x8xf32>
    %cst_58 = arith.constant dense<0xFF800000> : vector<8xf32>
    %168 = vector.multi_reduction <maximumf>, %160, %cst_58 [1] : vector<8x8xf32> to vector<8xf32>
    %169 = vector.shape_cast %168 : vector<8xf32> to vector<8x1xf32>
    %170 = vector.broadcast %169 : vector<8x1xf32> to vector<8x8xf32>
    %171 = arith.subf %160, %170 : vector<8x8xf32>
    %172 = math.exp %171 : vector<8x8xf32>
    %cst_59 = arith.constant dense<0.000000e+00> : vector<8xf32>
    %173 = vector.multi_reduction <add>, %172, %cst_59 [1] : vector<8x8xf32> to vector<8xf32>
    %174 = vector.shape_cast %173 : vector<8xf32> to vector<8x1xf32>
    %175 = vector.broadcast %174 : vector<8x1xf32> to vector<8x8xf32>
    %176 = arith.divf %172, %175 : vector<8x8xf32>
    %cst_60 = arith.constant dense<0xFF800000> : vector<8xf32>
    %177 = vector.multi_reduction <maximumf>, %167, %cst_60 [1] : vector<8x8xf32> to vector<8xf32>
    %178 = vector.shape_cast %177 : vector<8xf32> to vector<8x1xf32>
    %179 = vector.broadcast %178 : vector<8x1xf32> to vector<8x8xf32>
    %180 = arith.subf %167, %179 : vector<8x8xf32>
    %181 = math.exp %180 : vector<8x8xf32>
    %cst_61 = arith.constant dense<0.000000e+00> : vector<8xf32>
    %182 = vector.multi_reduction <add>, %181, %cst_61 [1] : vector<8x8xf32> to vector<8xf32>
    %183 = vector.shape_cast %182 : vector<8xf32> to vector<8x1xf32>
    %184 = vector.broadcast %183 : vector<8x1xf32> to vector<8x8xf32>
    %185 = arith.divf %181, %184 : vector<8x8xf32>
    %186 = vector.broadcast %0 : f32 to vector<8x8xf32>
    %187 = arith.mulf %186, %185 : vector<8x8xf32>
    %188 = arith.subf %176, %187 : vector<8x8xf32>
    %189 = vector.extract_strided_slice %136 {offsets = [0, 0], sizes = [8, 32], strides = [1, 1]} : vector<8x64xf32> to vector<8x32xf32>
    %cst_62 = arith.constant dense<0.000000e+00> : vector<8x32xf32>
    %190 = tpu.matmul %188, %189, %cst_62 {dimension_numbers = #tpu.dot_dimension_numbers<[1], [0], [0], [1], [0, 0, 1, 1], [], []>} : vector<8x8xf32>, vector<8x32xf32>, vector<8x32xf32> -> vector<8x32xf32>
    %191 = arith.mulf %190, %190 : vector<8x32xf32>
    %cst_63 = arith.constant dense<0.000000e+00> : vector<8xf32>
    %192 = vector.multi_reduction <add>, %191, %cst_63 [1] : vector<8x32xf32> to vector<8xf32>
    %193 = vector.shape_cast %192 : vector<8xf32> to vector<8x1xf32>
    %cst_64 = arith.constant 3.200000e+01 : f32
    %194 = vector.broadcast %cst_64 : f32 to vector<8x1xf32>
    %195 = arith.divf %193, %194 : vector<8x1xf32>
    %cst_65 = arith.constant 9.99999974E-6 : f32
    %196 = vector.broadcast %cst_65 : f32 to vector<8x1xf32>
    %197 = arith.addf %195, %196 : vector<8x1xf32>
    %198 = math.rsqrt %197 : vector<8x1xf32>
    %199 = vector.broadcast %198 : vector<8x1xf32> to vector<8x32xf32>
    %200 = arith.mulf %190, %199 : vector<8x32xf32>
    %201 = vector.extract_strided_slice %6 {offsets = [0, 0], sizes = [32, 64], strides = [1, 1]} : vector<64x64xf32> to vector<32x64xf32>
    %cst_66 = arith.constant dense<0.000000e+00> : vector<8x64xf32>
    %202 = tpu.matmul %200, %201, %cst_66 {dimension_numbers = #tpu.dot_dimension_numbers<[1], [0], [0], [1], [0, 0, 1, 1], [], []>} : vector<8x32xf32>, vector<32x64xf32>, vector<8x64xf32> -> vector<8x64xf32>
    %203 = arith.addf %153, %202 : vector<8x64xf32>
    %204 = vector.extract_strided_slice %143 {offsets = [0, 16], sizes = [8, 8], strides = [1, 1]} : vector<8x32xf32> to vector<8x8xf32>
    %205 = vector.extract_strided_slice %149 {offsets = [0, 16], sizes = [8, 8], strides = [1, 1]} : vector<8x32xf32> to vector<8x8xf32>
    %cst_67 = arith.constant dense<0.000000e+00> : vector<8x8xf32>
    %206 = tpu.matmul %204, %205, %cst_67 {dimension_numbers = #tpu.dot_dimension_numbers<[1], [1], [0], [0], [0, 0, 1, 0], [], []>} : vector<8x8xf32>, vector<8x8xf32>, vector<8x8xf32> -> vector<8x8xf32>
    %207 = vector.extract_strided_slice %146 {offsets = [0, 16], sizes = [8, 8], strides = [1, 1]} : vector<8x32xf32> to vector<8x8xf32>
    %208 = vector.extract_strided_slice %152 {offsets = [0, 16], sizes = [8, 8], strides = [1, 1]} : vector<8x32xf32> to vector<8x8xf32>
    %cst_68 = arith.constant dense<0.000000e+00> : vector<8x8xf32>
    %209 = tpu.matmul %207, %208, %cst_68 {dimension_numbers = #tpu.dot_dimension_numbers<[1], [1], [0], [0], [0, 0, 1, 0], [], []>} : vector<8x8xf32>, vector<8x8xf32>, vector<8x8xf32> -> vector<8x8xf32>
    %210 = arith.addf %206, %209 : vector<8x8xf32>
    %211 = vector.extract_strided_slice %143 {offsets = [0, 24], sizes = [8, 8], strides = [1, 1]} : vector<8x32xf32> to vector<8x8xf32>
    %212 = vector.extract_strided_slice %149 {offsets = [0, 24], sizes = [8, 8], strides = [1, 1]} : vector<8x32xf32> to vector<8x8xf32>
    %cst_69 = arith.constant dense<0.000000e+00> : vector<8x8xf32>
    %213 = tpu.matmul %211, %212, %cst_69 {dimension_numbers = #tpu.dot_dimension_numbers<[1], [1], [0], [0], [0, 0, 1, 0], [], []>} : vector<8x8xf32>, vector<8x8xf32>, vector<8x8xf32> -> vector<8x8xf32>
    %214 = vector.extract_strided_slice %146 {offsets = [0, 24], sizes = [8, 8], strides = [1, 1]} : vector<8x32xf32> to vector<8x8xf32>
    %215 = vector.extract_strided_slice %152 {offsets = [0, 24], sizes = [8, 8], strides = [1, 1]} : vector<8x32xf32> to vector<8x8xf32>
    %cst_70 = arith.constant dense<0.000000e+00> : vector<8x8xf32>
    %216 = tpu.matmul %214, %215, %cst_70 {dimension_numbers = #tpu.dot_dimension_numbers<[1], [1], [0], [0], [0, 0, 1, 0], [], []>} : vector<8x8xf32>, vector<8x8xf32>, vector<8x8xf32> -> vector<8x8xf32>
    %217 = arith.addf %213, %216 : vector<8x8xf32>
    %cst_71 = arith.constant dense<0xFF800000> : vector<8xf32>
    %218 = vector.multi_reduction <maximumf>, %210, %cst_71 [1] : vector<8x8xf32> to vector<8xf32>
    %219 = vector.shape_cast %218 : vector<8xf32> to vector<8x1xf32>
    %220 = vector.broadcast %219 : vector<8x1xf32> to vector<8x8xf32>
    %221 = arith.subf %210, %220 : vector<8x8xf32>
    %222 = math.exp %221 : vector<8x8xf32>
    %cst_72 = arith.constant dense<0.000000e+00> : vector<8xf32>
    %223 = vector.multi_reduction <add>, %222, %cst_72 [1] : vector<8x8xf32> to vector<8xf32>
    %224 = vector.shape_cast %223 : vector<8xf32> to vector<8x1xf32>
    %225 = vector.broadcast %224 : vector<8x1xf32> to vector<8x8xf32>
    %226 = arith.divf %222, %225 : vector<8x8xf32>
    %cst_73 = arith.constant dense<0xFF800000> : vector<8xf32>
    %227 = vector.multi_reduction <maximumf>, %217, %cst_73 [1] : vector<8x8xf32> to vector<8xf32>
    %228 = vector.shape_cast %227 : vector<8xf32> to vector<8x1xf32>
    %229 = vector.broadcast %228 : vector<8x1xf32> to vector<8x8xf32>
    %230 = arith.subf %217, %229 : vector<8x8xf32>
    %231 = math.exp %230 : vector<8x8xf32>
    %cst_74 = arith.constant dense<0.000000e+00> : vector<8xf32>
    %232 = vector.multi_reduction <add>, %231, %cst_74 [1] : vector<8x8xf32> to vector<8xf32>
    %233 = vector.shape_cast %232 : vector<8xf32> to vector<8x1xf32>
    %234 = vector.broadcast %233 : vector<8x1xf32> to vector<8x8xf32>
    %235 = arith.divf %231, %234 : vector<8x8xf32>
    %236 = vector.broadcast %0 : f32 to vector<8x8xf32>
    %237 = arith.mulf %236, %235 : vector<8x8xf32>
    %238 = arith.subf %226, %237 : vector<8x8xf32>
    %239 = vector.extract_strided_slice %136 {offsets = [0, 32], sizes = [8, 32], strides = [1, 1]} : vector<8x64xf32> to vector<8x32xf32>
    %cst_75 = arith.constant dense<0.000000e+00> : vector<8x32xf32>
    %240 = tpu.matmul %238, %239, %cst_75 {dimension_numbers = #tpu.dot_dimension_numbers<[1], [0], [0], [1], [0, 0, 1, 1], [], []>} : vector<8x8xf32>, vector<8x32xf32>, vector<8x32xf32> -> vector<8x32xf32>
    %241 = arith.mulf %240, %240 : vector<8x32xf32>
    %cst_76 = arith.constant dense<0.000000e+00> : vector<8xf32>
    %242 = vector.multi_reduction <add>, %241, %cst_76 [1] : vector<8x32xf32> to vector<8xf32>
    %243 = vector.shape_cast %242 : vector<8xf32> to vector<8x1xf32>
    %cst_77 = arith.constant 3.200000e+01 : f32
    %244 = vector.broadcast %cst_77 : f32 to vector<8x1xf32>
    %245 = arith.divf %243, %244 : vector<8x1xf32>
    %cst_78 = arith.constant 9.99999974E-6 : f32
    %246 = vector.broadcast %cst_78 : f32 to vector<8x1xf32>
    %247 = arith.addf %245, %246 : vector<8x1xf32>
    %248 = math.rsqrt %247 : vector<8x1xf32>
    %249 = vector.broadcast %248 : vector<8x1xf32> to vector<8x32xf32>
    %250 = arith.mulf %240, %249 : vector<8x32xf32>
    %251 = vector.extract_strided_slice %6 {offsets = [32, 0], sizes = [32, 64], strides = [1, 1]} : vector<64x64xf32> to vector<32x64xf32>
    %cst_79 = arith.constant dense<0.000000e+00> : vector<8x64xf32>
    %252 = tpu.matmul %250, %251, %cst_79 {dimension_numbers = #tpu.dot_dimension_numbers<[1], [0], [0], [1], [0, 0, 1, 1], [], []>} : vector<8x32xf32>, vector<32x64xf32>, vector<8x64xf32> -> vector<8x64xf32>
    %253 = arith.addf %203, %252 : vector<8x64xf32>
    %c1_80 = arith.constant 1 : index
    %c0_81 = arith.constant 0 : index
    %c0_82 = arith.constant 0 : index
    %254 = vector.load %arg8[%c1_80, %c0_81, %c0_82] : memref<2x8x64xf32, #tpu.memory_space<vmem>>, vector<1x8x64xf32>
    %255 = vector.shape_cast %254 : vector<1x8x64xf32> to vector<8x64xf32>
    %256 = vector.shape_cast %253 : vector<8x64xf32> to vector<1x8x64xf32>
    tpu.vector_store %arg8[%c1_80, %c0_81, %c0_82], %256 {strides = array<i32>} : memref<2x8x64xf32, #tpu.memory_space<vmem>>, vector<1x8x64xf32>,
    return
  }
}

</mosaic_0001>

<bundles_post_ra>
// kernel: tile.19
= control target key start
LH: loop header
LB: loop body
LE: loop exit
PB: predicated region body
PF: predicated region fallthrough
CT: control target
= control target key end

     0   :  { %vm42_vm0 = vcmask 1047556   ;;  %vm44_vm1 = vcmask 64512   ;;  %s93_s22 = smov 8   ;;  %s94_s25 = smov 16   ;;  %vm54_vm2 = vcmask 261312   ;;  %vm64_vm3 = vcmask 195712   ;;  %s146_s0 = inlined_call_operand.vmem [shape: f32[8,4,8], index: 0, kind: input, shape index: {}]   ;;  %s147_s1 = inlined_call_operand.vmem [shape: f32[8,32], index: 1, kind: output, shape index: {}]  }
   0x1   :  { %v82_v0 = vld [vmem:[%s146_s0 + $0x1c] sm:$0xf]  ;;  %v83_v1 = vld [vmem:[%s146_s0 + $0x18] sm:$0xf]  ;;  %v84_v2 = vld [vmem:[%s146_s0 + $0x14] sm:$0xf] }
   0x2   :  { %8 = vst [vmem:[#allocation0 + $0x38] sm:$0xf] %v82_v0  ;;  %13 = vst [vmem:[#allocation0 + $0x30] sm:$0xf] %v83_v1  ;;  %v85_v3 = vld [vmem:[%s146_s0 + $0x10] sm:$0xf] }
   0x3   :  { %18 = vst [vmem:[#allocation0 + $0x28] sm:$0xf] %v84_v2  ;;  %v86_v4 = vld [vmem:[%s146_s0 + $0xc] sm:$0xf]  ;;  %v87_v5 = vld [vmem:[%s146_s0 + $0x8] sm:$0xf] }
   0x4   :  { %23 = vst [vmem:[#allocation0 + $0x20] sm:$0xf] %v85_v3  ;;  %28 = vst [vmem:[#allocation0 + $0x18] sm:$0xf] %v86_v4  ;;  %v88_v6 = vld [vmem:[%s146_s0 + $0x4] sm:$0xf] }
   0x5   :  { %33 = vst [vmem:[#allocation0 + $0x10] sm:$0xf] %v87_v5  ;;  %v38_v7 = vld [vmem:[%s146_s0] sm:$0xf]  ;;  %37 = vst [vmem:[#allocation0 + $0x8] sm:$0xf] %v88_v6 }
   0x6   :  { %39 = vst [vmem:[#allocation0] sm:$0xf] %v38_v7  ;;  %s92_s0 = smov 24   ;;  %vm74_vm4 = vcmask 130112  }
   0xb   :  { %v49_v8 = vld [vmem:[#allocation0 + $0x3] ss:$8 sm:$0xf0]   ;;  %v59_v9 = vld [vmem:[#allocation0 + $0x2] ss:$8 sm:$0xf0]  }
   0xc   :  { %v69_v14 = vld [vmem:[#allocation0 + $0x1] ss:$8 sm:$0xf0]   ;;  %v41_v17 = vld [vmem:[#allocation0] ss:$8 sm:$0xf0]  }
   0xd   :  { %v47_v10 = vld [vmem:[#allocation0 + $0x3] ss:$8 sm:$0xf]   ;;  %v57_v11 = vld [vmem:[#allocation0 + $0x2] ss:$8 sm:$0xf]  }
   0xe   :  { %v51_v12 = vsel %vm42_vm0, %v49_v8, %v47_v10  ;;  %v67_v13 = vld [vmem:[#allocation0 + $0x1] ss:$8 sm:$0xf]   ;;  %v40_v16 = vld [vmem:[#allocation0] ss:$8 sm:$0xf]   ;;  %v61_v18 = vsel %vm42_vm0, %v59_v9, %v57_v11 }
   0xf   :  { %52 = vrot.lane.b32.xlu0 %v51_v12, %s92_s0  ;;  %v71_v15 = vsel %vm42_vm0, %v69_v14, %v67_v13  ;;  %v43_v19 = vsel %vm42_vm0, %v41_v17, %v40_v16 }
  0x10   :  { %72 = vrot.lane.b32.xlu1 %v71_v15, %s93_s22  ;;  %45 = vst.msk [vmem:[%s147_s1] sm:$0xff] %vm44_vm1, %v43_v19  }
  0x13   :  { %62 = vrot.lane.b32.xlu0 %v61_v18, %s94_s25 }
  0x81   :  { %v53_v20 = vpop.permute.xlu0 %52  }
  0x82   :  { %55 = vst.msk [vmem:[%s147_s1] sm:$0xff] %vm54_vm2, %v53_v20   ;;  %v73_v21 = vpop.permute.xlu1 %72  }
  0x85   :  { %v63_v22 = vpop.permute.xlu0 %62  }
  0x86   :  { %65 = vst.msk [vmem:[%s147_s1] sm:$0xff] %vm64_vm3, %v63_v22  }
  0x87   :  { %75 = vst.msk [vmem:[%s147_s1] sm:$0xff] %vm74_vm4, %v73_v21  }

// kernel: multihead_flash_diff2_forward.1
= control target key start
LH: loop header
LB: loop body
LE: loop exit
PB: predicated region body
PF: predicated region fallthrough
CT: control target
= control target key end

     0   :  { %14 = vsyncpa [#allocation4], 0  ;;  %s3764_s0 = inlined_call_operand.<no memory space> [shape: f32[1,1], index: 0, kind: input, shape index: {}]   ;;  %s3765_s1 = inlined_call_operand.hbm [shape: f32[2,8,64], index: 1, kind: input, shape index: {}]   ;;  %s3766_s2 = inlined_call_operand.vmem [shape: f32[64,64], index: 2, kind: input, shape index: {}]   ;;  %s3767_s3 = inlined_call_operand.vmem [shape: f32[64,64], index: 3, kind: input, shape index: {}]   ;;  %s3768_s4 = inlined_call_operand.vmem [shape: f32[64,64], index: 4, kind: input, shape index: {}]   ;;  %s3769_s5 = inlined_call_operand.vmem [shape: f32[8,32], index: 5, kind: input, shape index: {}]   ;;  %s3770_s6 = inlined_call_operand.vmem [shape: f32[8,32], index: 6, kind: input, shape index: {}]   ;;  %s3771_s7 = inlined_call_operand.hbm [shape: f32[64,64], index: 7, kind: input, shape index: {}]   ;;  %s3772_s8 = inlined_call_operand.hbm [shape: f32[2,8,64], index: 8, kind: output, shape index: {}]  }
   0x1   :  { %15 = vsyncpa [#allocation7], 0 }
   0x2   :  { %16 = vsyncpa [#allocation5], 0  ;;  %s3231_s27 = smov [#allocation3]   ;;  %s3159_s9 = scalar_lea.hbm %s3765_s1, 256 }
   0x3   :  { %s24_s28 = sshll.u32 %s3231_s27, 4  ;;  %p3160_p0 = scmp.ne.s32.totalorder %s3765_s1, %s3159_s9  ;;  %s25_s28 = int_to_ptr.vmem [resolvable:$true] %s24_s28 }
   0x4   :  { %p3163_p1 = scmp.lt.u32.totalorder %s3159_s9, %s3765_s1 }
   0x6   :  { %p3165_p2 = pnand %p3163_p1, %p3160_p0 }
   0x8   :  { %3168 = shalt.err (!%p3165_p2)
}
   0x9   :  { %s3169_s14 = scalar_lea.vmem %s25_s28, 256  ;;  %p3174_p4 = scmp.lt.s32.totalorder %s25_s28, %s25_s28 }
   0xa   :  { %p3170_p3 = scmp.ne.s32.totalorder %s25_s28, %s3169_s14  ;;  %p3175_p5 = scmp.lt.s32.totalorder %s3169_s14, %s3169_s14 }
   0xc   :  { %p3176_p6 = por %p3175_p5, %p3174_p4 }
   0xe   :  { %p3177_p7 = pnand %p3176_p6, %p3170_p3 }
  0x10   :  { %3180 = shalt.err (!%p3177_p7)
}
  0x11   :  { %s3232_s15 = smov 128   ;;  %s3233_s16 = smov 8  }
  0x12   :  { %30 = dma.hbm_to_vmem [thread:$0]  %s3765_s1, 256, %s25_s28, [#allocation4], %s3232_s15, %s3232_s15, %s3233_s16  }
  0x13   :  { %s3234_s19 = smov [#allocation6]   ;;  %s3181_s23 = scalar_lea.hbm %s3771_s7, 1024 }
  0x14   :  { %s46_s20 = sshll.u32 %s3234_s19, 4  ;;  %p3182_p8 = scmp.ne.s32.totalorder %s3771_s7, %s3181_s23  ;;  %s47_s20 = int_to_ptr.vmem [resolvable:$true] %s46_s20 }
  0x15   :  { %p3185_p9 = scmp.lt.u32.totalorder %s3181_s23, %s3771_s7 }
  0x17   :  { %p3187_p10 = pnand %p3185_p9, %p3182_p8 }
  0x19   :  { %3190 = shalt.err (!%p3187_p10)
}
  0x1a   :  { %s3191_s29 = scalar_lea.vmem %s47_s20, 1024  ;;  %p3196_p12 = scmp.lt.s32.totalorder %s47_s20, %s47_s20 }
  0x1b   :  { %p3192_p11 = scmp.ne.s32.totalorder %s47_s20, %s3191_s29  ;;  %p3197_p13 = scmp.lt.s32.totalorder %s3191_s29, %s3191_s29 }
  0x1d   :  { %p3198_p0 = por %p3197_p13, %p3196_p12 }
  0x1f   :  { %p3199_p1 = pnand %p3198_p0, %p3192_p11 }
  0x21   :  { %3202 = shalt.err (!%p3199_p1)
}
  0x22   :  { %52 = dma.hbm_to_vmem [thread:$0]  %s3771_s7, 1024, %s47_s20, [#allocation7], %s3232_s15, %s3232_s15, %s3233_s16  }
  0x23   :  { %3225 = dma.done.wait [#allocation4], 256  }
  0x24   :  { %3226 = vsyncadd [#allocation4], 4294967040 }
  0x25   :  { %3227 = dma.done.wait [#allocation7], 1024  }
  0x26   :  { %3228 = vsyncadd [#allocation7], 4294966272  ;;  %v3235_v0 = vmov 0.0|0.0   ;;  %vm3236_vm0 = vmmov 0   ;;  %v3237_v1 = vmov 0.0   ;;  %v62_v2 = vld [vmem:[%s3766_s2] sm:$0xff] }
  0x27   :  { %2991 = vmatprep.subr.bf16.mxu0 %v3235_v0  ;;  %3003 = vmatprep.subr.bf16.mxu1 %v3235_v0  ;;  %v63_v3 = vld [vmem:[%s3766_s2 + $0x8] sm:$0xff]  ;;  %v70_v4 = vld [vmem:[%s3767_s3] sm:$0xff]  ;;  %v64_v7 = vld [vmem:[%s3766_s2 + $0x10] sm:$0xff]  ;;  %s3238_s11 = smov 32   ;;  %vm95_vm1 = vcmask 523264   ;;  %vm345_vm2 = vcmask 64512  }
  0x28   :  { %2749 = vmatprep.mubr.msk.f32.mxu0 %vm3236_vm0, %v3237_v1  ;;  %2768 = vmatprep.mubr.msk.f32.mxu1 %vm3236_vm0, %v3237_v1  ;;  %v3334_v5 = vpack.c.bf16 %v63_v3, %v62_v2  ;;  %v71_v6 = vld [vmem:[%s3767_s3 + $0x8] sm:$0xff]  ;;  %v65_v8 = vld [vmem:[%s3766_s2 + $0x18] sm:$0xff]  ;;  %v72_v10 = vld [vmem:[%s3767_s3 + $0x10] sm:$0xff]  ;;  %s3241_s22 = smov 104   ;;  %s3242_s23 = smov 112   ;;  %vm753_vm3 = vcmask 261120  }
  0x29   :  { %v3345_v9 = vpack.c.bf16 %v71_v6, %v70_v4  ;;  %v73_v11 = vld [vmem:[%s3767_s3 + $0x18] sm:$0xff]  ;;  %v3354_v12 = vpack.c.bf16 %v65_v8, %v64_v7  ;;  %v66_v14 = vld [vmem:[%s3766_s2 + $0x20] sm:$0xff]  ;;  %v67_v15 = vld [vmem:[%s3766_s2 + $0x28] sm:$0xff] }
  0x2a   :  { %2993 = vmatpush3.bf16.msra.mxu0 %v3334_v5  ;;  %v3358_v13 = vpack.c.bf16 %v73_v11, %v72_v10  ;;  %v74_v16 = vld [vmem:[%s3767_s3 + $0x20] sm:$0xff]  ;;  %v75_v17 = vld [vmem:[%s3767_s3 + $0x28] sm:$0xff]  ;;  %v3380_v19 = vpack.c.bf16 %v67_v15, %v66_v14  ;;  %v68_v22 = vld [vmem:[%s3766_s2 + $0x30] sm:$0xff] }
  0x2b   :  { %3005 = vmatpush3.bf16.msra.mxu1 %v3345_v9  ;;  %2994 = vmatprep.subr.bf16.mxu0 %v3235_v0  ;;  %v3376_v18 = vld [vmem:[%s3769_s5] sm:$0xff]  ;;  %v3389_v21 = vpack.c.bf16 %v75_v17, %v74_v16  ;;  %v69_v23 = vld [vmem:[%s3766_s2 + $0x38] sm:$0xff]  ;;  %v76_v24 = vld [vmem:[%s3767_s3 + $0x30] sm:$0xff]  ;;  %s3239_s2 = smov 96  }
  0x2c   :  { %3006 = vmatprep.subr.bf16.mxu1 %v3235_v0  ;;  %322 = vrot.lane.b32.xlu0 %v3376_v18, %s3238_s11  ;;  %v3385_v20 = vld [vmem:[%s3770_s6] sm:$0xff]  ;;  %v77_v25 = vld [vmem:[%s3767_s3 + $0x38] sm:$0xff]  ;;  %v3406_v26 = vpack.c.bf16 %v69_v23, %v68_v22  ;;  %s3240_s3 = smov 120   ;;  %v79_v59 = vld [vmem:[%s3768_s4 + $0x8] sm:$0xff] }
  0x2d   :  { %v3410_v27 = vpack.c.bf16 %v77_v25, %v76_v24  ;;  %v3414_v28 = vld [vmem:[#allocation3] sm:$0xff]  ;;  %v80_v60 = vld [vmem:[%s3768_s4 + $0x10] sm:$0xff]  ;;  %v81_v62 = vld [vmem:[%s3768_s4 + $0x18] sm:$0xff] }
  0x2e   :  { %2996 = vmatpush3.bf16.msra.mxu0 %v3354_v12  ;;  %v78_v58 = vld [vmem:[%s3768_s4] sm:$0xff]  ;;  %v3503_v63 = vpack.c.bf16 %v81_v62, %v80_v60  ;;  %v83_v3 = vld [vmem:[%s3768_s4 + $0x28] sm:$0xff]  ;;  %v84_v6 = vld [vmem:[%s3768_s4 + $0x30] sm:$0xff] }
  0x2f   :  { %3008 = vmatpush3.bf16.msra.mxu1 %v3358_v13  ;;  %2997 = vmatprep.subr.bf16.mxu0 %v3235_v0  ;;  %v3497_v61 = vpack.c.bf16 %v79_v59, %v78_v58  ;;  %v82_v2 = vld [vmem:[%s3768_s4 + $0x20] sm:$0xff]  ;;  %v85_v7 = vld [vmem:[%s3768_s4 + $0x38] sm:$0xff] }
  0x30   :  { %3009 = vmatprep.subr.bf16.mxu1 %v3235_v0  ;;  %311 = vrot.lane.b32.xlu0 %v3385_v20, %s3238_s11  ;;  %v3513_v4 = vpack.c.bf16 %v83_v3, %v82_v2  ;;  %v3523_v8 = vpack.c.bf16 %v85_v7, %v84_v6 }
  0x32   :  { %2999 = vmatpush3.bf16.msra.mxu0 %v3380_v19 }
  0x33   :  { %3011 = vmatpush3.bf16.msra.mxu1 %v3389_v21  ;;  %3000 = vmatprep.subr.bf16.mxu0 %v3235_v0 }
  0x34   :  { %3012 = vmatprep.subr.bf16.mxu1 %v3235_v0 }
  0x36   :  { %3002 = vmatpush3.bf16.msra.mxu0 %v3406_v26 }
  0x37   :  { %3014 = vmatpush3.bf16.msra.mxu1 %v3410_v27  ;;  %3015 = vmatprep.subr.bf16.mxu0 %v3235_v0 }
  0x38   :  { %2790 = vmatprep.subr.mxu1 %v3237_v1 }
  0x39   :  { %2750 = vmatmul.mubr.msk.f32.vlgmr.msra.gmra.mrb[0].mxu0 %vm95_vm1, %v3414_v28 }
  0x3a   :  { %2769 = vmatmul.mubr.msk.f32.vlgmr.msra.gmra.mrb[0].mxu1 %vm95_vm1, %v3414_v28  ;;  %2787 = vmatprep.mubr.msk.f32.mxu0 %vm3236_vm0, %v3237_v1 }
  0x3b   :  { %2792 = vmatprep.mubr.msk.f32.mxu1 %vm3236_vm0, %v3237_v1  ;;  %3017 = vmatpush3.bf16.msra.mxu0 %v3497_v61 }
  0x3c   :  { %3018 = vmatprep.subr.bf16.mxu0 %v3235_v0 }
  0x3f   :  { %3020 = vmatpush3.bf16.msra.mxu0 %v3503_v63 }
  0x40   :  { %3021 = vmatprep.subr.bf16.mxu0 %v3235_v0 }
  0x43   :  { %3023 = vmatpush3.bf16.msra.mxu0 %v3513_v4 }
  0x44   :  { %3024 = vmatprep.subr.bf16.mxu0 %v3235_v0 }
  0x47   :  { %3026 = vmatpush3.bf16.msra.mxu0 %v3523_v8 }
  0x48   :  { %2810 = vmatprep.subr.mxu0 %v3237_v1 }
  0x4a   :  { %2788 = vmatmul.mubr.msk.f32.vlgmr.msra.gmra.mrb[2].mxu0 %vm95_vm1, %v3414_v28 }
  0x4b   :  { %2812 = vmatprep.mubr.msk.f32.mxu0 %vm3236_vm0, %v3237_v1 }
  0x9e   :  { %v3427_v29 = vpop.permute.xlu0 %322 }
  0xa2   :  { %v3429_v30 = vpop.permute.xlu0 %311 }
 0x10c   :  { %v165_v31 = vpop.f32.mrb[0].mxu0 }
 0x10d   :  { %v235_v32 = vpop.f32.mrb[0].mxu1  ;;  %v2751_v33 = vpop.f32.mrb[1].mxu0  ;;  %v325_v37 = vmul.f32 %v3427_v29, %v165_v31  ;;  %v314_v38 = vmul.f32 %v3429_v30, %v165_v31  ;;  %v320_v43 = vmul.f32 %v165_v31, %v3385_v20  ;;  %v309_v48 = vmul.f32 %v165_v31, %v3376_v18 }
 0x10e   :  { %v2770_v34 = vpop.f32.mrb[1].mxu1  ;;  %v339_v35 = vmul.f32 %v3427_v29, %v235_v32  ;;  %v332_v36 = vmul.f32 %v3429_v30, %v235_v32  ;;  %v338_v39 = vmul.f32 %v235_v32, %v3385_v20  ;;  %v331_v44 = vmul.f32 %v235_v32, %v3376_v18 }
 0x110   :  { %341 = vrot.lane.b32.xlu1 %v339_v35, %s3239_s2  ;;  %334 = vrot.lane.b32.xlu0 %v332_v36, %s3239_s2 }
 0x114   :  { %327 = vrot.lane.b32.xlu1 %v325_v37, %s3239_s2 }
 0x118   :  { %316 = vrot.lane.b32.xlu1 %v314_v38, %s3239_s2 }
 0x11d   :  { %v305_v33 = vpop.f32.mrb[2].mxu0 }
 0x11e   :  { %v2789_v34 = vpop.f32.mrb[3].mxu0  ;;  %2811 = vmatpush3.msra.mxu0 %v305_v33 }
 0x11f   :  { %2825 = vmatprep.subr.mxu0 %v3237_v1 }
 0x182   :  { %v342_v40 = vpop.permute.xlu1 %341  ;;  %v335_v42 = vpop.permute.xlu0 %334 }
 0x183   :  { %v3440_v41 = vadd.f32 %v342_v40, %v338_v39  ;;  %v3449_v47 = vsub.f32 %v331_v44, %v335_v42  ;;  %v3548_v44 = vstv %s3764_s0  ;;  %s3243_s0 = smov [#allocation8]  }
 0x184   :  { %s2560_s18 = sshll.u32 %s3243_s0, 4  ;;  %s2561_s18 = int_to_ptr.vmem [resolvable:$true] %s2560_s18 }
 0x185   :  { %2791 = vmatpush3.xpose.msk.msra.mxu1 %vm345_vm2, %v3440_v41  ;;  %500 = vrot.lane.b32.xlu0 %v3440_v41, %s3240_s3  ;;  %s3203_s19 = scalar_lea.vmem %s2561_s18, 256  ;;  %p3208_p3 = scmp.lt.s32.totalorder %s2561_s18, %s2561_s18 }
 0x186   :  { %v328_v45 = vpop.permute.xlu1 %327  ;;  %2795 = vmatprep.subr.mxu1 %v3237_v1  ;;  %p3204_p2 = scmp.ne.s32.totalorder %s2561_s18, %s3203_s19  ;;  %p3209_p4 = scmp.lt.s32.totalorder %s3203_s19, %s3203_s19 }
 0x187   :  { %v330_v46 = vadd.f32 %v328_v45, %v320_v43 }
 0x188   :  { %p3210_p5 = por %p3209_p4, %p3208_p3 }
 0x189   :  { %2793 = vmatmul.mubr.msk.f32.vlgmr.msra.gmra.mrb[2].mxu1 %vm345_vm2, %v330_v46  ;;  %498 = vrot.lane.b32.xlu1 %v330_v46, %s3240_s3 }
 0x18a   :  { %578 = vrot.lane.b32.xlu0 %v3449_v47, %s3240_s3  ;;  %2796 = vmatpush3.xpose.msk.msra.mxu1 %vm345_vm2, %v3449_v47  ;;  %v317_v49 = vpop.permute.xlu1 %316  ;;  %p3211_p6 = pnand %p3210_p5, %p3204_p2 }
 0x18b   :  { %v3458_v50 = vsub.f32 %v309_v48, %v317_v49  ;;  %2797 = vmatprep.mubr.msk.f32.mxu1 %vm3236_vm0, %v3237_v1  ;;  %2800 = vmatprep.subr.mxu1 %v3237_v1 }
 0x18d   :  { %576 = vrot.lane.b32.xlu1 %v3458_v50, %s3240_s3 }
 0x191   :  { %2798 = vmatmul.mubr.msk.f32.vlgmr.msra.gmra.mrb[2].mxu1 %vm345_vm2, %v3458_v50 }
 0x192   :  { %2802 = vmatprep.mubr.msk.f32.mxu1 %vm3236_vm0, %v3237_v1 }
 0x1f7   :  { %v501_v51 = vpop.permute.xlu0 %500 }
 0x1f8   :  { %2801 = vmatpush3.xpose.msk.msra.mxu1 %vm345_vm2, %v501_v51 }
 0x1f9   :  { %2805 = vmatprep.subr.mxu1 %v3237_v1 }
 0x1fb   :  { %v499_v52 = vpop.permute.xlu1 %498 }
 0x1fc   :  { %v579_v53 = vpop.permute.xlu0 %578  ;;  %2803 = vmatmul.mubr.msk.f32.vlgmr.msra.gmra.mrb[4].mxu1 %vm345_vm2, %v499_v52 }
 0x1fd   :  { %2806 = vmatpush3.xpose.msk.msra.mxu1 %vm345_vm2, %v579_v53  ;;  %2807 = vmatprep.mubr.msk.f32.mxu1 %vm3236_vm0, %v3237_v1 }
 0x1fe   :  { %2815 = vmatprep.subr.mxu1 %v3237_v1 }
 0x1ff   :  { %v577_v54 = vpop.permute.xlu1 %576 }
 0x204   :  { %2808 = vmatmul.mubr.msk.f32.vlgmr.msra.gmra.mrb[4].mxu1 %vm345_vm2, %v577_v54 }
 0x205   :  { %2817 = vmatprep.mubr.msk.f32.mxu1 %vm3236_vm0, %v3237_v1 }
 0x264   :  { %v494_v55 = vpop.f32.mrb[2].mxu1 }
 0x265   :  { %v2799_v56 = vpop.f32.mrb[3].mxu1  ;;  %v654_v57 = vsel %vm345_vm2, %v494_v55, -inf }
 0x266   :  { %655 = vmax.xlane.f32.xlu1 %v654_v57 }
 0x277   :  { %920 = vrot.lane.b32.xlu1 %v3440_v41, %s3241_s22 }
 0x27b   :  { %918 = vrot.lane.b32.xlu1 %v330_v46, %s3241_s22 }
 0x27f   :  { %762 = vrot.lane.b32.xlu1 %v330_v46, %s3242_s23 }
 0x283   :  { %842 = vrot.lane.b32.xlu1 %v3449_v47, %s3242_s23 }
 0x287   :  { %840 = vrot.lane.b32.xlu1 %v3458_v50, %s3242_s23 }
 0x2d7   :  { %v650_v10 = vpop.f32.mrb[4].mxu1 }
 0x2d8   :  { %v2809_v11 = vpop.f32.mrb[5].mxu1  ;;  %v665_v14 = vsel %vm345_vm2, %v650_v10, -inf }
 0x2d9   :  { %666 = vmax.xlane.f32.xlu0 %v665_v14 }
 0x2f3   :  { %v656_v15 = vpop.xlane.xlu1 %655 }
 0x2f4   :  { %v657_v16 = vsub.f32 %v494_v55, %v656_v15 }
 0x2f6   :  { %v658_v23 = vmul.f32 1.442695, %v657_v16 }
 0x2f7   :  { %v921_v35 = vpop.permute.xlu1 %920 }
 0x2fb   :  { %v919_v36 = vpop.permute.xlu1 %918 }
 0x2ff   :  { %v763_v39 = vpop.permute.xlu1 %762 }
 0x303   :  { %v843_v42 = vpop.permute.xlu1 %842 }
 0x307   :  { %v841_v49 = vpop.permute.xlu1 %840 }
 0x366   :  { %v667_v17 = vpop.xlane.xlu0 %666 }
 0x367   :  { %v668_v22 = vsub.f32 %v650_v10, %v667_v17 }
 0x369   :  { %v669_v24 = vmul.f32 1.442695, %v668_v22 }
 0x36b   :  { %3119 = vpow2.f32 %v669_v24  ;;  %v87_v24 = vld [vmem:[#allocation6 + $0x8] sm:$0xff] }
 0x36c   :  { %3121 = vpow2.f32 %v658_v23  ;;  %v86_v23 = vld [vmem:[#allocation6] sm:$0xff] }
 0x375   :  { %v3120_v25 = vpop.eup %3119 }
 0x376   :  { %v671_v31 = vsel %vm345_vm2, %v3120_v25, 0.0  ;;  %v3122_v28 = vpop.eup %3121 }
 0x377   :  { %672 = vadd.xlane.f32.xlu0 %v671_v31  ;;  %v660_v32 = vsel %vm345_vm2, %v3122_v28, 0.0  ;;  %v88_v31 = vld [vmem:[#allocation6 + $0x10] sm:$0xff] }
 0x37b   :  { %661 = vadd.xlane.f32.xlu0 %v660_v32 }
 0x391   :  { %764 = vrot.lane.b32.xlu0 %v3440_v41, %s3242_s23 }
 0x395   :  { %998 = vrot.lane.b32.xlu0 %v3449_v47, %s3241_s22 }
 0x399   :  { %996 = vrot.lane.b32.xlu0 %v3458_v50, %s3241_s22 }
 0x404   :  { %v673_v37 = vpop.xlane.xlu0 %672 }
 0x405   :  { %3123 = vrcp.f32 %v673_v37 }
 0x408   :  { %v662_v38 = vpop.xlane.xlu0 %661 }
 0x409   :  { %3125 = vrcp.f32 %v662_v38 }
 0x40c   :  { %v765_v40 = vpop.permute.xlu0 %764 }
 0x40d   :  { %2816 = vmatpush3.xpose.msk.msra.mxu1 %vm345_vm2, %v765_v40 }
 0x40e   :  { %2820 = vmatprep.subr.mxu1 %v3237_v1 }
 0x40f   :  { %v3124_v41 = vpop.eup %3123 }
 0x410   :  { %v675_v43 = vmul.f32 %v3124_v41, %v3120_v25  ;;  %2818 = vmatmul.mubr.msk.f32.vlgmr.msra.gmra.mrb[6].mxu1 %vm345_vm2, %v763_v39  ;;  %v999_v50 = vpop.permute.xlu0 %998  ;;  %v3578_v25 = vpack.c.bf16 %v87_v24, %v86_v23 }
 0x411   :  { %2821 = vmatpush3.xpose.msk.msra.mxu1 %vm345_vm2, %v843_v42  ;;  %2822 = vmatprep.mubr.msk.f32.mxu1 %vm3236_vm0, %v3237_v1 }
 0x412   :  { %2835 = vmatprep.subr.mxu1 %v3237_v1  ;;  %v677_v46 = vmul.f32 %v3548_v44, %v675_v43 }
 0x413   :  { %v3126_v45 = vpop.eup %3125 }
 0x414   :  { %v664_v47 = vmul.f32 %v3126_v45, %v3122_v28  ;;  %v997_v51 = vpop.permute.xlu0 %996  ;;  %v89_v28 = vld [vmem:[#allocation6 + $0x18] sm:$0xff] }
 0x415   :  { %v3582_v32 = vpack.c.bf16 %v89_v28, %v88_v31 }
 0x416   :  { %v678_v48 = vsub.f32 %v664_v47, %v677_v46  ;;  %v1331_v47 = vld [vmem:[#allocation3 + $0x8] sm:$0xff] }
 0x418   :  { %2813 = vmatmul.mubr.msk.f32.vlgmr.msra.gmra.mrb[4].mxu0 %vm345_vm2, %v678_v48  ;;  %2823 = vmatmul.mubr.msk.f32.vlgmr.msra.gmra.mrb[6].mxu1 %vm345_vm2, %v841_v49 }
 0x419   :  { %2826 = vmatpush3.xpose.msk.msra.mxu0 %vm345_vm2, %v921_v35  ;;  %2827 = vmatprep.mubr.msk.f32.mxu0 %vm3236_vm0, %v3237_v1 }
 0x41a   :  { %2830 = vmatprep.subr.mxu0 %v3237_v1  ;;  %2837 = vmatprep.mubr.msk.f32.mxu1 %vm3236_vm0, %v3237_v1 }
 0x41c   :  { %2828 = vmatmul.mubr.msk.f32.vlgmr.msra.gmra.mrb[6].mxu0 %vm345_vm2, %v919_v36 }
 0x41d   :  { %2831 = vmatpush3.xpose.msk.msra.mxu0 %vm345_vm2, %v999_v50  ;;  %2832 = vmatprep.mubr.msk.f32.mxu0 %vm3236_vm0, %v3237_v1 }
 0x41e   :  { %3033 = vmatprep.subr.bf16.mxu0 %v3235_v0 }
 0x424   :  { %2833 = vmatmul.mubr.msk.f32.vlgmr.msra.gmra.mrb[6].mxu0 %vm345_vm2, %v997_v51 }
 0x425   :  { %2859 = vmatprep.mubr.msk.f32.mxu0 %vm3236_vm0, %v3237_v1  ;;  %3035 = vmatpush3.bf16.msra.mxu0 %v3578_v25 }
 0x426   :  { %3036 = vmatprep.subr.bf16.mxu0 %v3235_v0 }
 0x429   :  { %3038 = vmatpush3.bf16.msra.mxu0 %v3582_v32 }
 0x42a   :  { %3051 = vmatprep.subr.bf16.mxu0 %v3235_v0 }
 0x4eb   :  { %v748_v52 = vpop.f32.mrb[4].mxu0  ;;  %v914_v53 = vpop.f32.mrb[6].mxu1 }
 0x4ec   :  { %v2814_v54 = vpop.f32.mrb[5].mxu0  ;;  %v2824_v55 = vpop.f32.mrb[7].mxu1  ;;  %v1074_v56 = vsel %vm345_vm2, %v914_v53, -inf  ;;  %v752_v16 = vmul.f32 %v748_v52, %v748_v52 }
 0x4ed   :  { %1075 = vmax.xlane.f32.xlu1 %v1074_v56  ;;  %v91_v54 = vld [vmem:[#allocation6 + $0x28] sm:$0xff]  ;;  %v92_v55 = vld [vmem:[#allocation6 + $0x30] sm:$0xff] }
 0x4ee   :  { %v754_v22 = vsel %vm753_vm3, %v752_v16, 0.0 }
 0x4f7   :  { %v1070_v57 = vpop.f32.mrb[6].mxu0 }
 0x4f8   :  { %v2834_v58 = vpop.f32.mrb[7].mxu0  ;;  %v1085_v59 = vsel %vm345_vm2, %v1070_v57, -inf }
 0x4f9   :  { %1086 = vmax.xlane.f32.xlu0 %v1085_v59 }
 0x4fe   :  { %1099 = vrot.lane.b32.xlu1 %v305_v33, %s3239_s2 }
 0x57a   :  { %v1076_v60 = vpop.xlane.xlu1 %1075 }
 0x57b   :  { %v1077_v2 = vsub.f32 %v914_v53, %v1076_v60  ;;  %v90_v53 = vld [vmem:[#allocation6 + $0x20] sm:$0xff] }
 0x57c   :  { %v3609_v56 = vpack.c.bf16 %v91_v54, %v90_v53 }
 0x57d   :  { %v1078_v7 = vmul.f32 1.442695, %v1077_v2 }
 0x57e   :  { %v1100_v62 = vpop.permute.xlu1 %1099 }
 0x57f   :  { %2836 = vmatpush3.msra.mxu1 %v1100_v62 }
 0x580   :  { %3027 = vmatprep.subr.bf16.mxu1 %v3235_v0 }
 0x586   :  { %v1087_v3 = vpop.xlane.xlu0 %1086 }
 0x587   :  { %v1088_v6 = vsub.f32 %v1070_v57, %v1087_v3  ;;  %v93_v57 = vld [vmem:[#allocation6 + $0x38] sm:$0xff] }
 0x588   :  { %v3613_v58 = vpack.c.bf16 %v93_v57, %v92_v55 }
 0x589   :  { %v1089_v10 = vmul.f32 1.442695, %v1088_v6 }
 0x58b   :  { %3127 = vpow2.f32 %v1089_v10 }
 0x58c   :  { %3129 = vpow2.f32 %v1078_v7 }
 0x595   :  { %v3128_v11 = vpop.eup %3127 }
 0x596   :  { %v1091_v14 = vsel %vm345_vm2, %v3128_v11, 0.0  ;;  %v3130_v15 = vpop.eup %3129 }
 0x597   :  { %1092 = vadd.xlane.f32.xlu0 %v1091_v14  ;;  %v1080_v17 = vsel %vm345_vm2, %v3130_v15, 0.0 }
 0x59b   :  { %1081 = vadd.xlane.f32.xlu0 %v1080_v17 }
 0x59f   :  { %755 = vadd.xlane.f32.xlu0 %v754_v22 }
 0x624   :  { %v1093_v33 = vpop.xlane.xlu0 %1092 }
 0x625   :  { %3131 = vrcp.f32 %v1093_v33 }
 0x628   :  { %v1082_v34 = vpop.xlane.xlu0 %1081 }
 0x629   :  { %3133 = vrcp.f32 %v1082_v34 }
 0x62c   :  { %v756_v35 = vpop.xlane.xlu0 %755 }
 0x62d   :  { %v758_v36 = vmul.f32 0.03125, %v756_v35 }
 0x62f   :  { %v3132_v37 = vpop.eup %3131  ;;  %v759_v38 = vadd.f32 1e-05, %v758_v36 }
 0x630   :  { %v1095_v39 = vmul.f32 %v3132_v37, %v3128_v11 }
 0x631   :  { %3135 = vrsqrt.f32 %v759_v38 }
 0x632   :  { %v1096_v41 = vmul.f32 %v1095_v39, %v3548_v44 }
 0x633   :  { %v3134_v40 = vpop.eup %3133 }
 0x634   :  { %v1084_v42 = vmul.f32 %v3134_v40, %v3130_v15 }
 0x636   :  { %v1097_v43 = vsub.f32 %v1084_v42, %v1096_v41 }
 0x638   :  { %2838 = vmatmul.mubr.msk.f32.vlgmr.msra.gmra.mrb[8].mxu1 %vm345_vm2, %v1097_v43 }
 0x639   :  { %2848 = vmatprep.mubr.msk.f32.mxu1 %vm3236_vm0, %v3237_v1  ;;  %3029 = vmatpush3.bf16.msra.mxu1 %v3609_v56 }
 0x63a   :  { %3030 = vmatprep.subr.bf16.mxu1 %v3235_v0 }
 0x63b   :  { %v3136_v45 = vpop.eup %3135 }
 0x63c   :  { %v761_v46 = vmul.f32 %v3136_v45, %v748_v52 }
 0x63d   :  { %3032 = vmatpush3.bf16.msra.mxu1 %v3613_v58 }
 0x63e   :  { %2860 = vmatmul.mubr.msk.f32.vlgmr.msra.gmra.mrb[8].mxu0 %vm753_vm3, %v761_v46  ;;  %3039 = vmatprep.subr.bf16.mxu1 %v3235_v0 }
 0x63f   :  { %3053 = vmatpush3.bf16.msra.mxu0 %v3345_v9  ;;  %2897 = vmatprep.mubr.msk.f32.mxu0 %vm3236_vm0, %v3237_v1 }
 0x640   :  { %3054 = vmatprep.subr.bf16.mxu0 %v3235_v0 }
 0x643   :  { %3056 = vmatpush3.bf16.msra.mxu0 %v3358_v13 }
 0x644   :  { %3057 = vmatprep.subr.bf16.mxu0 %v3235_v0 }
 0x647   :  { %3059 = vmatpush3.bf16.msra.mxu0 %v3389_v21 }
 0x648   :  { %3060 = vmatprep.subr.bf16.mxu0 %v3235_v0 }
 0x64b   :  { %3062 = vmatpush3.bf16.msra.mxu0 %v3410_v27 }
 0x64c   :  { %2919 = vmatprep.subr.mxu0 %v3237_v1 }
 0x64e   :  { %2898 = vmatmul.mubr.msk.f32.vlgmr.msra.gmra.mrb[10].mxu0 %vm95_vm1, %v1331_v47 }
 0x64f   :  { %2921 = vmatprep.mubr.msk.f32.mxu0 %vm3236_vm0, %v3237_v1 }
 0x70b   :  { %v1171_v9 = vpop.f32.mrb[8].mxu1 }
 0x70c   :  { %v1175_v48 = vmul.f32 %v1171_v9, %v1171_v9  ;;  %v2839_v49 = vpop.f32.mrb[9].mxu1 }
 0x70e   :  { %v1176_v13 = vsel %vm753_vm3, %v1175_v48, 0.0 }
 0x70f   :  { %1177 = vadd.xlane.f32.xlu0 %v1176_v13 }
 0x711   :  { %v1325_v50 = vpop.f32.mrb[8].mxu0 }
 0x712   :  { %v2861_v21 = vpop.f32.mrb[9].mxu0 }
 0x721   :  { %v3605_v51 = vpop.f32.mrb[10].mxu0 }
 0x722   :  { %v2899_v52 = vpop.f32.mrb[11].mxu0  ;;  %v1567_v27 = vmul.f32 %v3605_v51, %v3427_v29  ;;  %v1566_v62 = vmul.f32 %v3605_v51, %v3385_v20 }
 0x725   :  { %1569 = vrot.lane.b32.xlu0 %v1567_v27, %s3239_s2 }
 0x79c   :  { %v1178_v59 = vpop.xlane.xlu0 %1177 }
 0x79d   :  { %v1179_v60 = vmul.f32 0.03125, %v1178_v59 }
 0x79f   :  { %v1180_v2 = vadd.f32 1e-05, %v1179_v60 }
 0x7a0   :  { %v1570_v3 = vpop.permute.xlu0 %1569 }
 0x7a1   :  { %3137 = vrsqrt.f32 %v1180_v2  ;;  %v3620_v6 = vadd.f32 %v1570_v3, %v1566_v62 }
 0x7a3   :  { %2920 = vmatpush3.xpose.msk.msra.mxu0 %vm345_vm2, %v3620_v6 }
 0x7a4   :  { %2924 = vmatprep.subr.mxu0 %v3237_v1 }
 0x7ab   :  { %v3138_v7 = vpop.eup %3137 }
 0x7ac   :  { %v1182_v10 = vmul.f32 %v3138_v7, %v1171_v9 }
 0x7ae   :  { %2849 = vmatmul.mubr.msk.f32.vlgmr.msra.gmra.mrb[10].mxu1 %vm753_vm3, %v1182_v10 }
 0x7af   :  { %3041 = vmatpush3.bf16.msra.mxu1 %v3334_v5  ;;  %2878 = vmatprep.mubr.msk.f32.mxu1 %vm3236_vm0, %v3237_v1 }
 0x7b0   :  { %3042 = vmatprep.subr.bf16.mxu1 %v3235_v0 }
 0x7b3   :  { %3044 = vmatpush3.bf16.msra.mxu1 %v3354_v12 }
 0x7b4   :  { %3045 = vmatprep.subr.bf16.mxu1 %v3235_v0 }
 0x7b7   :  { %3047 = vmatpush3.bf16.msra.mxu1 %v3380_v19 }
 0x7b8   :  { %3048 = vmatprep.subr.bf16.mxu1 %v3235_v0 }
 0x7bb   :  { %3050 = vmatpush3.bf16.msra.mxu1 %v3406_v26 }
 0x7bc   :  { %3063 = vmatprep.subr.bf16.mxu1 %v3235_v0 }
 0x7be   :  { %2879 = vmatmul.mubr.msk.f32.vlgmr.msra.gmra.mrb[12].mxu1 %vm95_vm1, %v1331_v47 }
 0x7bf   :  { %3065 = vmatpush3.bf16.msra.mxu1 %v3497_v61  ;;  %2916 = vmatprep.mubr.msk.f32.mxu1 %vm3236_vm0, %v3237_v1 }
 0x7c0   :  { %3066 = vmatprep.subr.bf16.mxu1 %v3235_v0 }
 0x7c3   :  { %3068 = vmatpush3.bf16.msra.mxu1 %v3503_v63 }
 0x7c4   :  { %3069 = vmatprep.subr.bf16.mxu1 %v3235_v0 }
 0x7c7   :  { %3071 = vmatpush3.bf16.msra.mxu1 %v3513_v4  ;;  %v1560_v4 = vmul.f32 %v3605_v51, %v3429_v30 }
 0x7c8   :  { %3072 = vmatprep.subr.bf16.mxu1 %v3235_v0 }
 0x7cb   :  { %3074 = vmatpush3.bf16.msra.mxu1 %v3523_v8 }
 0x7cc   :  { %2929 = vmatprep.subr.mxu1 %v3237_v1 }
 0x7ce   :  { %2917 = vmatmul.mubr.msk.f32.vlgmr.msra.gmra.mrb[14].mxu1 %vm95_vm1, %v1331_v47 }
 0x7cf   :  { %2931 = vmatprep.mubr.msk.f32.mxu1 %vm3236_vm0, %v3237_v1 }
 0x881   :  { %v1252_v5 = vpop.f32.mrb[10].mxu1 }
 0x882   :  { %v1326_v12 = vadd.f32 %v1325_v50, %v1252_v5  ;;  %v2850_v19 = vpop.f32.mrb[11].mxu1 }
 0x884   :  { %1329 = vst.msk [vmem:[#allocation8] sm:$0xff] %vm95_vm1, %v1326_v12 }
 0x891   :  { %v1401_v26 = vpop.f32.mrb[12].mxu1 }
 0x892   :  { %v2880_v61 = vpop.f32.mrb[13].mxu1  ;;  %v1553_v63 = vmul.f32 %v1401_v26, %v3427_v29  ;;  %v1546_v8 = vmul.f32 %v1401_v26, %v3429_v30  ;;  %v1552_v11 = vmul.f32 %v1401_v26, %v3385_v20  ;;  %v1559_v29 = vmul.f32 %v3605_v51, %v3376_v18 }
 0x893   :  { %v1545_v20 = vmul.f32 %v1401_v26, %v3376_v18 }
 0x894   :  { %1555 = vrot.lane.b32.xlu1 %v1553_v63, %s3239_s2 }
 0x898   :  { %1562 = vrot.lane.b32.xlu1 %v1560_v4, %s3239_s2 }
 0x89c   :  { %1548 = vrot.lane.b32.xlu1 %v1546_v8, %s3239_s2 }
 0x8a0   :  { %1727 = vrot.lane.b32.xlu1 %v3620_v6, %s3240_s3 }
 0x8a1   :  { %v3677_v24 = vpop.f32.mrb[14].mxu1 }
 0x8a2   :  { %v2918_v31 = vpop.f32.mrb[15].mxu1 }
 0x906   :  { %v1556_v14 = vpop.permute.xlu1 %1555 }
 0x907   :  { %v1558_v15 = vadd.f32 %v1556_v14, %v1552_v11 }
 0x909   :  { %1725 = vrot.lane.b32.xlu0 %v1558_v15, %s3240_s3  ;;  %2922 = vmatmul.mubr.msk.f32.vlgmr.msra.gmra.mrb[12].mxu0 %vm345_vm2, %v1558_v15 }
 0x90a   :  { %v1563_v16 = vpop.permute.xlu1 %1562  ;;  %2926 = vmatprep.mubr.msk.f32.mxu0 %vm3236_vm0, %v3237_v1 }
 0x90b   :  { %v1565_v30 = vsub.f32 %v1559_v29, %v1563_v16 }
 0x90d   :  { %2925 = vmatpush3.xpose.msk.msra.mxu0 %vm345_vm2, %v1565_v30  ;;  %1805 = vrot.lane.b32.xlu1 %v1565_v30, %s3240_s3 }
 0x90e   :  { %v1549_v17 = vpop.permute.xlu1 %1548  ;;  %2939 = vmatprep.subr.mxu0 %v3237_v1 }
 0x90f   :  { %v1551_v22 = vsub.f32 %v1545_v20, %v1549_v17 }
 0x911   :  { %1803 = vrot.lane.b32.xlu0 %v1551_v22, %s3240_s3  ;;  %2927 = vmatmul.mubr.msk.f32.vlgmr.msra.gmra.mrb[12].mxu0 %vm345_vm2, %v1551_v22 }
 0x912   :  { %v1728_v23 = vpop.permute.xlu1 %1727  ;;  %2941 = vmatprep.mubr.msk.f32.mxu0 %vm3236_vm0, %v3237_v1  ;;  %2940 = vmatpush3.msra.mxu0 %v3677_v24 }
 0x913   :  { %2930 = vmatpush3.xpose.msk.msra.mxu1 %vm345_vm2, %v1728_v23  ;;  %2954 = vmatprep.subr.mxu0 %v3237_v1 }
 0x914   :  { %2934 = vmatprep.subr.mxu1 %v3237_v1 }
 0x97b   :  { %v1726_v18 = vpop.permute.xlu0 %1725 }
 0x97c   :  { %2932 = vmatmul.mubr.msk.f32.vlgmr.msra.gmra.mrb[16].mxu1 %vm345_vm2, %v1726_v18 }
 0x97d   :  { %2936 = vmatprep.mubr.msk.f32.mxu1 %vm3236_vm0, %v3237_v1 }
 0x97f   :  { %v1806_v28 = vpop.permute.xlu1 %1805 }
 0x980   :  { %2935 = vmatpush3.xpose.msk.msra.mxu1 %vm345_vm2, %v1806_v28 }
 0x981   :  { %2944 = vmatprep.subr.mxu1 %v3237_v1 }
 0x983   :  { %v1804_v33 = vpop.permute.xlu0 %1803 }
 0x984   :  { %2937 = vmatmul.mubr.msk.f32.vlgmr.msra.gmra.mrb[16].mxu1 %vm345_vm2, %v1804_v33 }
 0x985   :  { %2946 = vmatprep.mubr.msk.f32.mxu1 %vm3236_vm0, %v3237_v1 }
 0x9e4   :  { %v1721_v34 = vpop.f32.mrb[12].mxu0 }
 0x9e5   :  { %v2928_v35 = vpop.f32.mrb[13].mxu0  ;;  %v1881_v36 = vsel %vm345_vm2, %v1721_v34, -inf }
 0x9e6   :  { %1882 = vmax.xlane.f32.xlu0 %v1881_v36 }
 0xa57   :  { %v1877_v37 = vpop.f32.mrb[16].mxu1 }
 0xa58   :  { %v2938_v38 = vpop.f32.mrb[17].mxu1  ;;  %v1892_v39 = vsel %vm345_vm2, %v1877_v37, -inf }
 0xa59   :  { %1893 = vmax.xlane.f32.xlu1 %v1892_v39 }
 0xa73   :  { %v1883_v40 = vpop.xlane.xlu0 %1882 }
 0xa74   :  { %v1884_v41 = vsub.f32 %v1721_v34, %v1883_v40 }
 0xa76   :  { %v1885_v42 = vmul.f32 1.442695, %v1884_v41 }
 0xa78   :  { %3139 = vpow2.f32 %v1885_v42 }
 0xa82   :  { %v3140_v43 = vpop.eup %3139 }
 0xa83   :  { %v1887_v45 = vsel %vm345_vm2, %v3140_v43, 0.0 }
 0xa84   :  { %1888 = vadd.xlane.f32.xlu1 %v1887_v45 }
 0xa95   :  { %1988 = vrot.lane.b32.xlu1 %v3620_v6, %s3242_s23 }
 0xa99   :  { %2142 = vrot.lane.b32.xlu1 %v1558_v15, %s3241_s22 }
 0xa9d   :  { %2222 = vrot.lane.b32.xlu1 %v1565_v30, %s3241_s22 }
 0xaa1   :  { %2220 = vrot.lane.b32.xlu1 %v1551_v22, %s3241_s22 }
 0xae6   :  { %v1894_v46 = vpop.xlane.xlu1 %1893 }
 0xae7   :  { %v1895_v47 = vsub.f32 %v1877_v37, %v1894_v46 }
 0xae9   :  { %v1896_v9 = vmul.f32 1.442695, %v1895_v47 }
 0xaeb   :  { %3141 = vpow2.f32 %v1896_v9 }
 0xaf5   :  { %v3142_v48 = vpop.eup %3141 }
 0xaf6   :  { %v1898_v49 = vsel %vm345_vm2, %v3142_v48, 0.0 }
 0xaf7   :  { %1899 = vadd.xlane.f32.xlu0 %v1898_v49 }
 0xb0d   :  { %2144 = vrot.lane.b32.xlu0 %v3620_v6, %s3241_s22 }
 0xb11   :  { %1986 = vrot.lane.b32.xlu0 %v1558_v15, %s3242_s23  ;;  %v1889_v13 = vpop.xlane.xlu1 %1888 }
 0xb12   :  { %3143 = vrcp.f32 %v1889_v13 }
 0xb15   :  { %2066 = vrot.lane.b32.xlu0 %v1565_v30, %s3242_s23  ;;  %v1989_v50 = vpop.permute.xlu1 %1988 }
 0xb16   :  { %2945 = vmatpush3.xpose.msk.msra.mxu1 %vm345_vm2, %v1989_v50 }
 0xb17   :  { %2949 = vmatprep.subr.mxu1 %v3237_v1 }
 0xb19   :  { %2064 = vrot.lane.b32.xlu0 %v1551_v22, %s3242_s23  ;;  %v2143_v60 = vpop.permute.xlu1 %2142 }
 0xb1c   :  { %v3144_v27 = vpop.eup %3143 }
 0xb1d   :  { %v1891_v57 = vmul.f32 %v3144_v27, %v3140_v43  ;;  %v2223_v3 = vpop.permute.xlu1 %2222 }
 0xb21   :  { %v2221_v6 = vpop.permute.xlu1 %2220 }
 0xb84   :  { %v1900_v21 = vpop.xlane.xlu0 %1899 }
 0xb85   :  { %3145 = vrcp.f32 %v1900_v21 }
 0xb88   :  { %v2145_v51 = vpop.permute.xlu0 %2144 }
 0xb8c   :  { %v1987_v52 = vpop.permute.xlu0 %1986 }
 0xb8d   :  { %2947 = vmatmul.mubr.msk.f32.vlgmr.msra.gmra.mrb[18].mxu1 %vm345_vm2, %v1987_v52 }
 0xb8e   :  { %2951 = vmatprep.mubr.msk.f32.mxu1 %vm3236_vm0, %v3237_v1 }
 0xb8f   :  { %v3146_v53 = vpop.eup %3145 }
 0xb90   :  { %v1902_v54 = vmul.f32 %v3146_v53, %v3142_v48  ;;  %v2067_v55 = vpop.permute.xlu0 %2066 }
 0xb91   :  { %2950 = vmatpush3.xpose.msk.msra.mxu1 %vm345_vm2, %v2067_v55 }
 0xb92   :  { %v1903_v59 = vmul.f32 %v1902_v54, %v3548_v44  ;;  %2964 = vmatprep.subr.mxu1 %v3237_v1 }
 0xb94   :  { %v2065_v62 = vpop.permute.xlu0 %2064  ;;  %v1904_v2 = vsub.f32 %v1891_v57, %v1903_v59 }
 0xb95   :  { %2952 = vmatmul.mubr.msk.f32.vlgmr.msra.gmra.mrb[18].mxu1 %vm345_vm2, %v2065_v62 }
 0xb96   :  { %2942 = vmatmul.mubr.msk.f32.vlgmr.msra.gmra.mrb[14].mxu0 %vm345_vm2, %v1904_v2  ;;  %2966 = vmatprep.mubr.msk.f32.mxu1 %vm3236_vm0, %v3237_v1 }
 0xb97   :  { %2955 = vmatpush3.xpose.msk.msra.mxu0 %vm345_vm2, %v2145_v51  ;;  %2956 = vmatprep.mubr.msk.f32.mxu0 %vm3236_vm0, %v3237_v1 }
 0xb98   :  { %2959 = vmatprep.subr.mxu0 %v3237_v1 }
 0xb9a   :  { %2957 = vmatmul.mubr.msk.f32.vlgmr.msra.gmra.mrb[16].mxu0 %vm345_vm2, %v2143_v60 }
 0xb9b   :  { %2960 = vmatpush3.xpose.msk.msra.mxu0 %vm345_vm2, %v2223_v3  ;;  %2961 = vmatprep.mubr.msk.f32.mxu0 %vm3236_vm0, %v3237_v1 }
 0xb9c   :  { %3075 = vmatprep.subr.bf16.mxu0 %v3235_v0 }
 0xba2   :  { %2962 = vmatmul.mubr.msk.f32.vlgmr.msra.gmra.mrb[16].mxu0 %vm345_vm2, %v2221_v6 }
 0xba3   :  { %3077 = vmatpush3.bf16.msra.mxu0 %v3609_v56  ;;  %2977 = vmatprep.mubr.msk.f32.mxu0 %vm3236_vm0, %v3237_v1 }
 0xba4   :  { %3078 = vmatprep.subr.bf16.mxu0 %v3235_v0 }
 0xba7   :  { %3080 = vmatpush3.bf16.msra.mxu0 %v3613_v58 }
 0xba8   :  { %3081 = vmatprep.subr.bf16.mxu0 %v3235_v0 }
 0xc68   :  { %v2138_v7 = vpop.f32.mrb[18].mxu1 }
 0xc69   :  { %v1974_v10 = vpop.f32.mrb[14].mxu0  ;;  %v2953_v5 = vpop.f32.mrb[19].mxu1  ;;  %v2298_v12 = vsel %vm345_vm2, %v2138_v7, -inf }
 0xc6a   :  { %v2943_v19 = vpop.f32.mrb[15].mxu0  ;;  %2299 = vmax.xlane.f32.xlu0 %v2298_v12  ;;  %v1978_v38 = vmul.f32 %v1974_v10, %v1974_v10 }
 0xc6c   :  { %v1979_v39 = vsel %vm753_vm3, %v1978_v38, 0.0 }
 0xc75   :  { %v2294_v26 = vpop.f32.mrb[16].mxu0 }
 0xc76   :  { %v2963_v61 = vpop.f32.mrb[17].mxu0  ;;  %v2309_v56 = vsel %vm345_vm2, %v2294_v26, -inf }
 0xc77   :  { %2310 = vmax.xlane.f32.xlu1 %v2309_v56 }
 0xcf7   :  { %v2300_v63 = vpop.xlane.xlu0 %2299 }
 0xcf8   :  { %v2301_v4 = vsub.f32 %v2138_v7, %v2300_v63 }
 0xcfa   :  { %v2302_v8 = vmul.f32 1.442695, %v2301_v4 }
 0xcfc   :  { %3147 = vpow2.f32 %v2302_v8 }
 0xd04   :  { %v2311_v11 = vpop.xlane.xlu1 %2310 }
 0xd05   :  { %v2312_v58 = vsub.f32 %v2294_v26, %v2311_v11 }
 0xd06   :  { %v3148_v14 = vpop.eup %3147 }
 0xd07   :  { %v2313_v15 = vmul.f32 1.442695, %v2312_v58  ;;  %v2304_v29 = vsel %vm345_vm2, %v3148_v14, 0.0 }
 0xd08   :  { %2305 = vadd.xlane.f32.xlu1 %v2304_v29 }
 0xd09   :  { %3149 = vpow2.f32 %v2313_v15 }
 0xd13   :  { %v3150_v16 = vpop.eup %3149 }
 0xd14   :  { %v2315_v30 = vsel %vm345_vm2, %v3150_v16, 0.0 }
 0xd15   :  { %2316 = vadd.xlane.f32.xlu0 %v2315_v30 }
 0xd2b   :  { %2323 = vrot.lane.b32.xlu0 %v3677_v24, %s3239_s2 }
 0xd95   :  { %v2306_v20 = vpop.xlane.xlu1 %2305 }
 0xd96   :  { %3151 = vrcp.f32 %v2306_v20 }
 0xda0   :  { %v3152_v23 = vpop.eup %3151 }
 0xda1   :  { %v2308_v28 = vmul.f32 %v3152_v23, %v3148_v14 }
 0xda2   :  { %v2317_v17 = vpop.xlane.xlu0 %2316 }
 0xda3   :  { %3153 = vrcp.f32 %v2317_v17 }
 0xda6   :  { %v2324_v22 = vpop.permute.xlu0 %2323 }
 0xda7   :  { %2965 = vmatpush3.msra.mxu1 %v2324_v22 }
 0xdad   :  { %v3154_v31 = vpop.eup %3153 }
 0xdae   :  { %v2319_v18 = vmul.f32 %v3154_v31, %v3150_v16 }
 0xdb0   :  { %v2320_v33 = vmul.f32 %v2319_v18, %v3548_v44 }
 0xdb2   :  { %v2321_v34 = vsub.f32 %v2308_v28, %v2320_v33 }
 0xdb4   :  { %2967 = vmatmul.mubr.msk.f32.vlgmr.msra.gmra.mrb[20].mxu1 %vm345_vm2, %v2321_v34 }
 0xe87   :  { %v2395_v35 = vpop.f32.mrb[20].mxu1 }
 0xe88   :  { %v2399_v36 = vmul.f32 %v2395_v35, %v2395_v35  ;;  %v2968_v37 = vpop.f32.mrb[21].mxu1 }
 0xe8a   :  { %v2400_v24 = vsel %vm753_vm3, %v2399_v36, 0.0 }
 0xe8b   :  { %2401 = vadd.xlane.f32.xlu1 %v2400_v24 }
 0xe8f   :  { %1980 = vadd.xlane.f32.xlu1 %v1979_v39 }
 0xf18   :  { %v2402_v40 = vpop.xlane.xlu1 %2401 }
 0xf19   :  { %v2403_v41 = vmul.f32 0.03125, %v2402_v40 }
 0xf1b   :  { %v2404_v42 = vadd.f32 1e-05, %v2403_v41 }
 0xf1c   :  { %v1981_v43 = vpop.xlane.xlu1 %1980 }
 0xf1d   :  { %3155 = vrsqrt.f32 %v2404_v42  ;;  %v1982_v45 = vmul.f32 0.03125, %v1981_v43 }
 0xf1f   :  { %v1983_v44 = vadd.f32 1e-05, %v1982_v45 }
 0xf21   :  { %3157 = vrsqrt.f32 %v1983_v44 }
 0xf27   :  { %v3156_v46 = vpop.eup %3155 }
 0xf28   :  { %v2406_v47 = vmul.f32 %v3156_v46, %v2395_v35 }
 0xf2a   :  { %2978 = vmatmul.mubr.msk.f32.vlgmr.msra.gmra.mrb[18].mxu0 %vm753_vm3, %v2406_v47 }
 0xf2b   :  { %3083 = vmatpush3.bf16.msra.mxu0 %v3578_v25  ;;  %2988 = vmatprep.mubr.msk.f32.mxu0 %vm3236_vm0, %v3237_v1  ;;  %v3158_v9 = vpop.eup %3157 }
 0xf2c   :  { %3084 = vmatprep.subr.bf16.mxu0 %v3235_v0  ;;  %v1985_v48 = vmul.f32 %v3158_v9, %v1974_v10 }
 0xf2f   :  { %3086 = vmatpush3.bf16.msra.mxu0 %v3582_v32 }
 0xf32   :  { %2989 = vmatmul.mubr.msk.f32.vlgmr.msra.gmra.mrb[18].mxu0 %vm753_vm3, %v1985_v48 }
0x1005   :  { %v2549_v49 = vpop.f32.mrb[18].mxu0 }
0x1006   :  { %2554 = vst.msk [vmem:[#allocation8 + $0x8] sm:$0xff] %vm95_vm1, %v2549_v49  ;;  %v2990_v13 = vpop.f32.mrb[19].mxu0 }
0x1007   :  { %3214 = shalt.err (!%p3211_p6)
}
0x1008   :  { %s3215_s21 = scalar_lea.hbm %s3772_s8, 256 }
0x1009   :  { %p3216_p7 = scmp.ne.s32.totalorder %s3772_s8, %s3215_s21  ;;  %p3219_p8 = scmp.lt.u32.totalorder %s3215_s21, %s3772_s8 }
0x100b   :  { %p3221_p9 = pnand %p3219_p8, %p3216_p7 }
0x100d   :  { %3224 = shalt.err (!%p3221_p9)
}
0x100e   :  { %2566 = dma.vmem_to_hbm [thread:$0]  %s2561_s18, 256, %s3772_s8, [#allocation5], %s3232_s15, %s3232_s15, %s3233_s16  }
0x100f   :  { %3229 = dma.done.wait [#allocation5], 256  }
0x1010   :  { %3230 = vsyncadd [#allocation5], 4294967040 }
0x1011   :  { %2570 = vsyncpa [#allocation4], 1 }
0x1012   :  { %2571 = vsyncpa [#allocation7], 1 }
0x1013   :  { %2572 = vsyncpa [#allocation5], 1 }

</bundles_post_ra>
